<compile_context>
chip_gen: v5e
topology: v5e:2x2
jax: 0.10.0
libtpu: 0.0.40
codegen_flags: <defaults>
</compile_context>

<pallas_src>
import jax
import jax.numpy as jnp
from jax.experimental import pallas as pl
from jax.experimental.pallas import tpu as pltpu

IN_FEATURES = 28 * 28          # 784 (divisible by 8; equals full last dim of x)
HIDDEN = 512
OUT_FEATURES = 10
OUT_PAD = 128                  # 10 padded up to one full lane group
NEG_BIG = -1e30                # padded fc3 bias lanes -> exp() == 0 (fp32 only!)
TB_MAX = 1024                  # batch-tile cap; ~16 MiB footprint, safe on v7x


def _round_up(x, m):
    return (x + m - 1) // m * m


def _mnist_mlp_kernel(x_ref, w1_ref, b1_ref, w2_ref, b2_ref, w3_ref, b3_ref,
                      o_ref):
    # x_ref: (TB, 784) fp32; weights bf16; biases fp32; o_ref: (TB, 128) bf16.
    x = x_ref[...].astype(jnp.bfloat16)                 # cast in VMEM, not HBM

    # fc1 + ReLU  (bf16 MXU, fp32 accumulate / elementwise, K=784 masked edge)
    h1 = jnp.dot(x, w1_ref[...], preferred_element_type=jnp.float32)
    h1 = jnp.maximum(h1 + b1_ref[...], 0.0).astype(jnp.bfloat16)

    # fc2 + ReLU
    h2 = jnp.dot(h1, w2_ref[...], preferred_element_type=jnp.float32)
    h2 = jnp.maximum(h2 + b2_ref[...], 0.0).astype(jnp.bfloat16)

    # fc3 + softmax(dim=1) over 128 padded lanes.  Padded w3 columns are zero
    # and padded b3 lanes are -1e30 (fp32), so padded logits are exactly -1e30
    # -> exp underflows to 0 and neither max nor sum is perturbed.  NOTE: this
    # trick relies on the logits/bias math staying in fp32.
    logits = jnp.dot(h2, w3_ref[...], preferred_element_type=jnp.float32)
    logits = logits + b3_ref[...]                       # (TB, 128) fp32
    m = jnp.max(logits, axis=-1, keepdims=True)
    e = jnp.exp(logits - m)
    s = jnp.sum(e, axis=-1, keepdims=True)
    o_ref[...] = (e / s).astype(o_ref.dtype)            # exact divide, bf16 out


def prepare_params(params):
    """One-time weight prep (hoisted out of the per-call path): bf16 cast,
    fc3 lane-pad 10 -> 128, fc3 bias pad with -1e30."""
    w1, b1, w2, b2, w3, b3 = params
    w1p = w1.astype(jnp.bfloat16)                                   # (784, 512)
    w2p = w2.astype(jnp.bfloat16)                                   # (512, 512)
    w3p = jnp.pad(w3, ((0, 0), (0, OUT_PAD - OUT_FEATURES))
                  ).astype(jnp.bfloat16)                            # (512, 128)
    b1p = b1.astype(jnp.float32).reshape(1, HIDDEN)
    b2p = b2.astype(jnp.float32).reshape(1, HIDDEN)
    b3p = jnp.pad(b3.astype(jnp.float32).reshape(1, OUT_FEATURES),
                  ((0, 0), (0, OUT_PAD - OUT_FEATURES)),
                  constant_values=NEG_BIG)                          # (1, 128)
    return (w1p, b1p, w2p, b2p, w3p, b3p)


def mnist_net_forward(x_nchw, prepared):
    """x_nchw: (B, 1, 28, 28) float32.  `prepared` from prepare_params().
    Returns (B, 10) float32 softmax probabilities."""
    w1p, b1p, w2p, b2p, w3p, b3p = prepared
    B = x_nchw.shape[0]

    # Flatten only; no pad / cast of activations in the wrapper.
    x = x_nchw.reshape(B, IN_FEATURES).astype(jnp.float32)

    # --- batch tiling ------------------------------------------------------
    # Cap tile at TB_MAX (v7x VMEM headroom); for mid-size batches force >= 2
    # tiles so the "parallel" batch axis shards across v7x's 2 TensorCores.
    B8 = _round_up(B, 8)
    n_tiles = max(1, pl.cdiv(B8, TB_MAX))
    if B8 > 8 and n_tiles < 2:
        n_tiles = 2
    TB = _round_up(pl.cdiv(B8, n_tiles), 8)
    B_pad = TB * n_tiles
    if B_pad != B:
        x = jnp.pad(x, ((0, B_pad - B), (0, 0)))

    grid = (B_pad // TB,)
    const = lambda i: (0, 0)   # weights/biases: same block every step (resident)

    out = pl.pallas_call(
        _mnist_mlp_kernel,
        out_shape=jax.ShapeDtypeStruct((B_pad, OUT_PAD), jnp.bfloat16),
        grid=grid,
        in_specs=[
            pl.BlockSpec((TB, IN_FEATURES), lambda i: (i, 0)),   # x tile (fp32)
            pl.BlockSpec((IN_FEATURES, HIDDEN), const),          # w1
            pl.BlockSpec((1, HIDDEN), const),                    # b1
            pl.BlockSpec((HIDDEN, HIDDEN), const),               # w2
            pl.BlockSpec((1, HIDDEN), const),                    # b2
            pl.BlockSpec((HIDDEN, OUT_PAD), const),              # w3
            pl.BlockSpec((1, OUT_PAD), const),                   # b3
        ],
        out_specs=pl.BlockSpec((TB, OUT_PAD), lambda i: (i, 0)),
        compiler_params=pltpu.CompilerParams(
            dimension_semantics=("parallel",),
            vmem_limit_bytes=48 << 20,
        ),
    )(x, w1p, b1p, w2p, b2p, w3p, b3p)

    # Slice off batch/lane padding; fp32 return to match torch (negligible size).
    return out[:B, :OUT_FEATURES].astype(jnp.float32)


def init_params(key):
    """Deterministic init mimicking nn.Linear default (U[-1/sqrt(fan_in), +])."""
    def linear(key, fan_in, fan_out):
        kw, kb = jax.random.split(key)
        bound = 1.0 / jnp.sqrt(fan_in)
        # stored as (in, out) — transposed relative to torch's (out, in)
        w = jax.random.uniform(kw, (fan_in, fan_out), jnp.float32,
                               minval=-bound, maxval=bound)
        b = jax.random.uniform(kb, (fan_out,), jnp.float32,
                               minval=-bound, maxval=bound)
        return w, b

    k1, k2, k3 = jax.random.split(key, 3)
    w1, b1 = linear(k1, IN_FEATURES, HIDDEN)
    w2, b2 = linear(k2, HIDDEN, HIDDEN)
    w3, b3 = linear(k3, HIDDEN, OUT_FEATURES)
    return (w1, b1, w2, b2, w3, b3)


def _reference_forward(x_nchw, params):
    """Pure-JAX reference with the same bf16 matmul / fp32 accumulate scheme."""
    w1, b1, w2, b2, w3, b3 = params
    B = x_nchw.shape[0]
    x = x_nchw.reshape(B, IN_FEATURES).astype(jnp.bfloat16)
    h1 = jnp.maximum(jnp.dot(x, w1.astype(jnp.bfloat16),
                             preferred_element_type=jnp.float32) + b1, 0.0)
    h2 = jnp.maximum(jnp.dot(h1.astype(jnp.bfloat16), w2.astype(jnp.bfloat16),
                             preferred_element_type=jnp.float32) + b2, 0.0)
    logits = jnp.dot(h2.astype(jnp.bfloat16), w3.astype(jnp.bfloat16),
                     preferred_element_type=jnp.float32) + b3
    return jax.nn.softmax(logits, axis=-1)


if __name__ == "__main__":
    key = jax.random.PRNGKey(0)
    k_params, k_x = jax.random.split(key)

    params = init_params(k_params)
    prepared = prepare_params(params)          # one-time weight prep (hoisted)

    # Small MNIST-like batch: (B, C, H, W) = (8, 1, 28, 28)
    x = jax.random.normal(k_x, (8, 1, 28, 28), dtype=jnp.float32)

    probs = mnist_net_forward(x, prepared)
    probs = jax.block_until_ready(probs)

    assert probs.shape == (8, 10)
    # softmax rows should sum to ~1 (bf16 output -> loose tolerance)
    assert jnp.allclose(jnp.sum(probs, axis=1), 1.0, atol=2e-2)
    # match a pure-JAX bf16 reference
    ref = _reference_forward(x, params)
    assert jnp.allclose(probs, ref, atol=2e-2), float(jnp.max(jnp.abs(probs - ref)))
    print("KERNEL_OK")
</pallas_src>

<mosaic_0001>
module attributes {stable_mosaic.version = 11 : i64} {
  func.func @_mnist_mlp_kernel(%arg0: i32, %arg1: memref<8x784xf32, #tpu.memory_space<vmem>>, %arg2: memref<784x512xbf16, #tpu.memory_space<vmem>>, %arg3: memref<1x512xf32, #tpu.memory_space<vmem>>, %arg4: memref<512x512xbf16, #tpu.memory_space<vmem>>, %arg5: memref<1x512xf32, #tpu.memory_space<vmem>>, %arg6: memref<512x128xbf16, #tpu.memory_space<vmem>>, %arg7: memref<1x128xf32, #tpu.memory_space<vmem>>, %arg8: memref<8x128xbf16, #tpu.memory_space<vmem>>) attributes {dimension_semantics = [#tpu.dimension_semantics<parallel>], iteration_bounds = array<i64: 1>, scalar_prefetch = 0 : i64, scratch_operands = 0 : i64, tpu.core_type = #tpu.core_type<tc>, window_params = [{transform_indices = @transform_0, window_bounds = array<i64: 8, 784>}, {pipeline_mode = #tpu.pipeline_mode<synchronous>, transform_indices = @transform_1, window_bounds = array<i64: 784, 512>}, {pipeline_mode = #tpu.pipeline_mode<synchronous>, transform_indices = @transform_2, window_bounds = array<i64: 1, 512>}, {pipeline_mode = #tpu.pipeline_mode<synchronous>, transform_indices = @transform_3, window_bounds = array<i64: 512, 512>}, {pipeline_mode = #tpu.pipeline_mode<synchronous>, transform_indices = @transform_4, window_bounds = array<i64: 1, 512>}, {pipeline_mode = #tpu.pipeline_mode<synchronous>, transform_indices = @transform_5, window_bounds = array<i64: 512, 128>}, {pipeline_mode = #tpu.pipeline_mode<synchronous>, transform_indices = @transform_6, window_bounds = array<i64: 1, 128>}, {transform_indices = @transform_7, window_bounds = array<i64: 8, 128>}]} {
    %c0 = arith.constant 0 : index
    %c0_0 = arith.constant 0 : index
    %0 = vector.load %arg1[%c0, %c0_0] : memref<8x784xf32, #tpu.memory_space<vmem>>, vector<8x784xf32>
    %1 = arith.truncf %0 : vector<8x784xf32> to vector<8x784xbf16>
    %c0_1 = arith.constant 0 : index
    %c0_2 = arith.constant 0 : index
    %2 = vector.load %arg2[%c0_1, %c0_2] : memref<784x512xbf16, #tpu.memory_space<vmem>>, vector<784x512xbf16>
    %cst = arith.constant dense<0.000000e+00> : vector<8x512xf32>
    %3 = tpu.matmul %1, %2, %cst {dimension_numbers = #tpu.dot_dimension_numbers<[1], [0], [0], [1], [0, 0, 1, 1], [], []>} : vector<8x784xbf16>, vector<784x512xbf16>, vector<8x512xf32> -> vector<8x512xf32>
    %c0_3 = arith.constant 0 : index
    %c0_4 = arith.constant 0 : index
    %4 = vector.load %arg3[%c0_3, %c0_4] : memref<1x512xf32, #tpu.memory_space<vmem>>, vector<1x512xf32>
    %5 = vector.broadcast %4 : vector<1x512xf32> to vector<8x512xf32>
    %6 = arith.addf %3, %5 : vector<8x512xf32>
    %cst_5 = arith.constant 0.000000e+00 : f32
    %7 = vector.broadcast %cst_5 : f32 to vector<8x512xf32>
    %8 = arith.maximumf %6, %7 : vector<8x512xf32>
    %9 = arith.truncf %8 : vector<8x512xf32> to vector<8x512xbf16>
    %c0_6 = arith.constant 0 : index
    %c0_7 = arith.constant 0 : index
    %10 = vector.load %arg4[%c0_6, %c0_7] : memref<512x512xbf16, #tpu.memory_space<vmem>>, vector<512x512xbf16>
    %cst_8 = arith.constant dense<0.000000e+00> : vector<8x512xf32>
    %11 = tpu.matmul %9, %10, %cst_8 {dimension_numbers = #tpu.dot_dimension_numbers<[1], [0], [0], [1], [0, 0, 1, 1], [], []>} : vector<8x512xbf16>, vector<512x512xbf16>, vector<8x512xf32> -> vector<8x512xf32>
    %c0_9 = arith.constant 0 : index
    %c0_10 = arith.constant 0 : index
    %12 = vector.load %arg5[%c0_9, %c0_10] : memref<1x512xf32, #tpu.memory_space<vmem>>, vector<1x512xf32>
    %13 = vector.broadcast %12 : vector<1x512xf32> to vector<8x512xf32>
    %14 = arith.addf %11, %13 : vector<8x512xf32>
    %cst_11 = arith.constant 0.000000e+00 : f32
    %15 = vector.broadcast %cst_11 : f32 to vector<8x512xf32>
    %16 = arith.maximumf %14, %15 : vector<8x512xf32>
    %17 = arith.truncf %16 : vector<8x512xf32> to vector<8x512xbf16>
    %c0_12 = arith.constant 0 : index
    %c0_13 = arith.constant 0 : index
    %18 = vector.load %arg6[%c0_12, %c0_13] : memref<512x128xbf16, #tpu.memory_space<vmem>>, vector<512x128xbf16>
    %cst_14 = arith.constant dense<0.000000e+00> : vector<8x128xf32>
    %19 = tpu.matmul %17, %18, %cst_14 {dimension_numbers = #tpu.dot_dimension_numbers<[1], [0], [0], [1], [0, 0, 1, 1], [], []>} : vector<8x512xbf16>, vector<512x128xbf16>, vector<8x128xf32> -> vector<8x128xf32>
    %c0_15 = arith.constant 0 : index
    %c0_16 = arith.constant 0 : index
    %20 = vector.load %arg7[%c0_15, %c0_16] : memref<1x128xf32, #tpu.memory_space<vmem>>, vector<1x128xf32>
    %21 = vector.broadcast %20 : vector<1x128xf32> to vector<8x128xf32>
    %22 = arith.addf %19, %21 : vector<8x128xf32>
    %cst_17 = arith.constant dense<0xFF800000> : vector<8xf32>
    %23 = vector.multi_reduction <maximumf>, %22, %cst_17 [1] : vector<8x128xf32> to vector<8xf32>
    %24 = vector.shape_cast %23 : vector<8xf32> to vector<8x1xf32>
    %25 = vector.broadcast %24 : vector<8x1xf32> to vector<8x128xf32>
    %26 = arith.subf %22, %25 : vector<8x128xf32>
    %27 = math.exp %26 : vector<8x128xf32>
    %cst_18 = arith.constant dense<0.000000e+00> : vector<8xf32>
    %28 = vector.multi_reduction <add>, %27, %cst_18 [1] : vector<8x128xf32> to vector<8xf32>
    %29 = vector.shape_cast %28 : vector<8xf32> to vector<8x1xf32>
    %30 = vector.broadcast %29 : vector<8x1xf32> to vector<8x128xf32>
    %31 = arith.divf %27, %30 : vector<8x128xf32>
    %32 = arith.truncf %31 : vector<8x128xf32> to vector<8x128xbf16>
    %c0_19 = arith.constant 0 : index
    %c0_20 = arith.constant 0 : index
    %33 = vector.load %arg8[%c0_19, %c0_20] : memref<8x128xbf16, #tpu.memory_space<vmem>>, vector<8x128xbf16>
    tpu.vector_store %arg8[%c0_19, %c0_20], %32 {strides = array<i32>} : memref<8x128xbf16, #tpu.memory_space<vmem>>, vector<8x128xbf16>,
    return
  }
  func.func @transform_0(%arg0: i32) -> (i32, i32) {
    %c0_i32 = arith.constant 0 : i32
    %c0_i32_0 = arith.constant 0 : i32
    return %arg0, %c0_i32 : i32, i32
  }
  func.func @transform_1(%arg0: i32) -> (i32, i32) {
    %c0_i32 = arith.constant 0 : i32
    %c0_i32_0 = arith.constant 0 : i32
    %c0_i32_1 = arith.constant 0 : i32
    return %c0_i32, %c0_i32_0 : i32, i32
  }
  func.func @transform_2(%arg0: i32) -> (i32, i32) {
    %c0_i32 = arith.constant 0 : i32
    %c0_i32_0 = arith.constant 0 : i32
    %c0_i32_1 = arith.constant 0 : i32
    return %c0_i32, %c0_i32_0 : i32, i32
  }
  func.func @transform_3(%arg0: i32) -> (i32, i32) {
    %c0_i32 = arith.constant 0 : i32
    %c0_i32_0 = arith.constant 0 : i32
    %c0_i32_1 = arith.constant 0 : i32
    return %c0_i32, %c0_i32_0 : i32, i32
  }
  func.func @transform_4(%arg0: i32) -> (i32, i32) {
    %c0_i32 = arith.constant 0 : i32
    %c0_i32_0 = arith.constant 0 : i32
    %c0_i32_1 = arith.constant 0 : i32
    return %c0_i32, %c0_i32_0 : i32, i32
  }
  func.func @transform_5(%arg0: i32) -> (i32, i32) {
    %c0_i32 = arith.constant 0 : i32
    %c0_i32_0 = arith.constant 0 : i32
    %c0_i32_1 = arith.constant 0 : i32
    return %c0_i32, %c0_i32_0 : i32, i32
  }
  func.func @transform_6(%arg0: i32) -> (i32, i32) {
    %c0_i32 = arith.constant 0 : i32
    %c0_i32_0 = arith.constant 0 : i32
    %c0_i32_1 = arith.constant 0 : i32
    return %c0_i32, %c0_i32_0 : i32, i32
  }
  func.func @transform_7(%arg0: i32) -> (i32, i32) {
    %c0_i32 = arith.constant 0 : i32
    %c0_i32_0 = arith.constant 0 : i32
    return %arg0, %c0_i32 : i32, i32
  }
}

</mosaic_0001>

<bundles_post_ra>
// kernel: tpu_custom_call.1
= control target key start
LH: loop header
LB: loop body
LE: loop exit
PB: predicated region body
PF: predicated region fallthrough
CT: control target
= control target key end

     0   :  { %12 = vsyncpa [#allocation3], 0  ;;  %s5228_s0 = inlined_call_operand.hbm [shape: f32[8,784], index: 0, kind: input, shape index: {}]   ;;  %s5229_s1 = inlined_call_operand.hbm [shape: bf16[784,512], index: 1, kind: input, shape index: {}]   ;;  %s5230_s2 = inlined_call_operand.hbm [shape: f32[1,512], index: 2, kind: input, shape index: {}]   ;;  %s5231_s3 = inlined_call_operand.hbm [shape: bf16[512,512], index: 3, kind: input, shape index: {}]   ;;  %s5232_s4 = inlined_call_operand.hbm [shape: f32[1,512], index: 4, kind: input, shape index: {}]   ;;  %s5233_s5 = inlined_call_operand.hbm [shape: bf16[512,128], index: 5, kind: input, shape index: {}]   ;;  %s5234_s6 = inlined_call_operand.vmem [shape: f32[1,128], index: 6, kind: input, shape index: {}]   ;;  %s5235_s7 = inlined_call_operand.hbm [shape: bf16[8,128], index: 7, kind: output, shape index: {}]  }
   0x1   :  { %13 = vsyncpa [#allocation6], 0 }
   0x2   :  { %14 = vsyncpa [#allocation9], 0 }
   0x3   :  { %15 = vsyncpa [#allocation12], 0  ;;  %s32_s26 = sshll.u32 %s5229_s1, 4  ;;  %s33_s26 = int_to_ptr.hbm [resolvable:$true] %s32_s26 }
   0x4   :  { %16 = vsyncpa [#allocation4], 0  ;;  %s5020_s27 = smov [#allocation5]   ;;  %s56_s8 = sshll.u32 %s5231_s3, 4  ;;  %s57_s8 = int_to_ptr.hbm [resolvable:$true] %s56_s8 }
   0x5   :  { %s34_s28 = sshll.u32 %s5020_s27, 4  ;;  %s5021_s9 = smov 256   ;;  %s35_s28 = int_to_ptr.vmem [resolvable:$true] %s34_s28 }
   0x6   :  { %s5022_s10 = smov 16   ;;  %s5023_s11 = smov [#allocation8]  }
   0x7   :  { %40 = dma.hbm_to_vmem [thread:$0]  %s33_s26, 25088, %s35_s28, [#allocation6], %s5021_s9, %s5021_s9, %s5022_s10  }
   0x8   :  { %s58_s12 = sshll.u32 %s5023_s11, 4  ;;  %s22_s15 = sshll.u32 %s5228_s0, 4  ;;  %s59_s12 = int_to_ptr.vmem [resolvable:$true] %s58_s12  ;;  %s23_s15 = int_to_ptr.hbm [resolvable:$true] %s22_s15 }
   0x9   :  { %64 = dma.hbm_to_vmem [thread:$0]  %s57_s8, 16384, %s59_s12, [#allocation9], %s5021_s9, %s5021_s9, %s5022_s10  }
   0xa   :  { %s46_s17 = sshll.u32 %s5230_s2, 4  ;;  %s5024_s18 = smov [#allocation2]   ;;  %s47_s17 = int_to_ptr.hbm [resolvable:$true] %s46_s17 }
   0xb   :  { %s24_s19 = sshll.u32 %s5024_s18, 4  ;;  %s5025_s3 = smov [#allocation7]   ;;  %s25_s19 = int_to_ptr.vmem [resolvable:$true] %s24_s19 }
   0xc   :  { %27 = dma.hbm_to_vmem [thread:$0]  %s23_s15, 896, %s25_s19, [#allocation3]  }
   0xd   :  { %s48_s20 = sshll.u32 %s5025_s3, 4  ;;  %s70_s23 = sshll.u32 %s5232_s4, 4  ;;  %s49_s20 = int_to_ptr.vmem [resolvable:$true] %s48_s20  ;;  %s71_s23 = int_to_ptr.hbm [resolvable:$true] %s70_s23 }
   0xe   :  { %51 = dma.hbm_to_vmem [thread:$0]  %s47_s17, 64, %s49_s20, [#allocation6]  }
   0xf   :  { %s80_s25 = sshll.u32 %s5233_s5, 4  ;;  %s5026_s26 = smov [#allocation10]   ;;  %s81_s25 = int_to_ptr.hbm [resolvable:$true] %s80_s25 }
  0x10   :  { %s72_s2 = sshll.u32 %s5026_s26, 4  ;;  %s5027_s27 = smov [#allocation11]   ;;  %s73_s2 = int_to_ptr.vmem [resolvable:$true] %s72_s2 }
  0x11   :  { %75 = dma.hbm_to_vmem [thread:$0]  %s71_s23, 64, %s73_s2, [#allocation9]  }
  0x12   :  { %s82_s28 = sshll.u32 %s5027_s27, 4  ;;  %s5028_s29 = smov 64   ;;  %s83_s28 = int_to_ptr.vmem [resolvable:$true] %s82_s28 }
  0x13   :  { %s5029_s30 = smov 4  }
  0x14   :  { %88 = dma.hbm_to_vmem [thread:$0]  %s81_s25, 4096, %s83_s28, [#allocation12], %s5028_s29, %s5028_s29, %s5029_s30  }
  0x15   :  { %5010 = dma.done.wait [#allocation3], 896  }
  0x16   :  { %5011 = vsyncadd [#allocation3], 4294966400 }
  0x17   :  { %5012 = dma.done.wait [#allocation6], 25152  }
  0x18   :  { %5013 = vsyncadd [#allocation6], 4294942144 }
  0x19   :  { %5014 = dma.done.wait [#allocation9], 16448  }
  0x1a   :  { %5015 = vsyncadd [#allocation9], 4294950848 }
  0x1b   :  { %5016 = dma.done.wait [#allocation12], 4096  }
  0x1c   :  { %5017 = vsyncadd [#allocation12], 4294963200  ;;  %v3156_v0 = vld [vmem:[#allocation5 + $0xe0] sm:$0xf]  ;;  %v4500_v1 = vld [vmem:[#allocation5 + $0xec] sm:$0xf0] }
  0x1d   :  { %v3284_v2 = vld [vmem:[#allocation5 + $0x1e0] sm:$0xf]  ;;  %v3157_v3 = vor.u32 %v4500_v1, %v3156_v0  ;;  %v4532_v4 = vld [vmem:[#allocation5 + $0x1ec] sm:$0xf0]  ;;  %vm1316_vm0 = vcmask 130048   ;;  %s3029_s11 = sshll.u32 %s5235_s7, 4  ;;  %s3030_s11 = int_to_ptr.hbm [resolvable:$true] %s3029_s11 }
  0x1e   :  { %v3412_v5 = vld [vmem:[#allocation5 + $0x2e0] sm:$0xf]  ;;  %v4564_v6 = vld [vmem:[#allocation5 + $0x2ec] sm:$0xf0]  ;;  %v3285_v7 = vor.u32 %v4532_v4, %v3284_v2 }
  0x1f   :  { %v3413_v8 = vor.u32 %v4564_v6, %v3412_v5  ;;  %v3540_v9 = vld [vmem:[#allocation5 + $0x3e0] sm:$0xf]  ;;  %v4596_v10 = vld [vmem:[#allocation5 + $0x3ec] sm:$0xf0]  ;;  %1320 = vmatpush.bf16.msra.mxu0 %v3157_v3 }
  0x20   :  { %v3140_v11 = vld [vmem:[#allocation5 + $0xc0] sm:$0xf]  ;;  %v3541_v12 = vor.u32 %v4596_v10, %v3540_v9  ;;  %v4496_v13 = vld [vmem:[#allocation5 + $0xcc] sm:$0xf0]  ;;  %1333 = vmatpush.bf16.msra.mxu1 %v3285_v7 }
  0x21   :  { %v3268_v14 = vld [vmem:[#allocation5 + $0x1c0] sm:$0xf]  ;;  %v4528_v15 = vld [vmem:[#allocation5 + $0x1cc] sm:$0xf0]  ;;  %1346 = vmatpush.bf16.msra.mxu2 %v3413_v8  ;;  %v3141_v16 = vor.u32 %v4496_v13, %v3140_v11 }
  0x22   :  { %v3269_v17 = vor.u32 %v4528_v15, %v3268_v14  ;;  %v3396_v18 = vld [vmem:[#allocation5 + $0x2c0] sm:$0xf]  ;;  %v4560_v19 = vld [vmem:[#allocation5 + $0x2cc] sm:$0xf0]  ;;  %1359 = vmatpush.bf16.msra.mxu3 %v3541_v12 }
  0x23   :  { %v3524_v20 = vld [vmem:[#allocation5 + $0x3c0] sm:$0xf]  ;;  %v3397_v21 = vor.u32 %v4560_v19, %v3396_v18  ;;  %v4592_v22 = vld [vmem:[#allocation5 + $0x3cc] sm:$0xf0]  ;;  %1321 = vmatpush.bf16.msra.mxu0 %v3141_v16 }
  0x24   :  { %v3124_v23 = vld [vmem:[#allocation5 + $0xa0] sm:$0xf]  ;;  %v4492_v24 = vld [vmem:[#allocation5 + $0xac] sm:$0xf0]  ;;  %v3525_v25 = vor.u32 %v4592_v22, %v3524_v20  ;;  %1334 = vmatpush.bf16.msra.mxu1 %v3269_v17 }
  0x25   :  { %v3252_v26 = vld [vmem:[#allocation5 + $0x1a0] sm:$0xf]  ;;  %v4524_v27 = vld [vmem:[#allocation5 + $0x1ac] sm:$0xf0]  ;;  %v3125_v29 = vor.u32 %v4492_v24, %v3124_v23  ;;  %1347 = vmatpush.bf16.msra.mxu2 %v3397_v21 }
  0x26   :  { %v3380_v28 = vld [vmem:[#allocation5 + $0x2a0] sm:$0xf]  ;;  %v4556_v30 = vld [vmem:[#allocation5 + $0x2ac] sm:$0xf0]  ;;  %v3253_v33 = vor.u32 %v4524_v27, %v3252_v26  ;;  %1360 = vmatpush.bf16.msra.mxu3 %v3525_v25 }
  0x27   :  { %v3508_v31 = vld [vmem:[#allocation5 + $0x3a0] sm:$0xf]  ;;  %v4588_v32 = vld [vmem:[#allocation5 + $0x3ac] sm:$0xf0]  ;;  %v3381_v34 = vor.u32 %v4556_v30, %v3380_v28  ;;  %1322 = vmatpush.bf16.msra.mxu0 %v3125_v29 }
  0x28   :  { %v3108_v35 = vld [vmem:[#allocation5 + $0x80] sm:$0xf]  ;;  %v4488_v36 = vld [vmem:[#allocation5 + $0x8c] sm:$0xf0]  ;;  %v3509_v38 = vor.u32 %v4588_v32, %v3508_v31  ;;  %1335 = vmatpush.bf16.msra.mxu1 %v3253_v33  ;;  %v4498_v33 = vld [vmem:[#allocation5 + $0xe4] sm:$0xf] }
  0x29   :  { %v3236_v37 = vld [vmem:[#allocation5 + $0x180] sm:$0xf]  ;;  %v4520_v39 = vld [vmem:[#allocation5 + $0x18c] sm:$0xf0]  ;;  %v3109_v44 = vor.u32 %v4488_v36, %v3108_v35  ;;  %1348 = vmatpush.bf16.msra.mxu2 %v3381_v34  ;;  %v3158_v34 = vld [vmem:[#allocation5 + $0xf0] sm:$0xf0] }
  0x2a   :  { %v3364_v40 = vld [vmem:[#allocation5 + $0x280] sm:$0xf]  ;;  %v4552_v41 = vld [vmem:[#allocation5 + $0x28c] sm:$0xf0]  ;;  %v3237_v45 = vor.u32 %v4520_v39, %v3236_v37  ;;  %1361 = vmatpush.bf16.msra.mxu3 %v3509_v38  ;;  %v118_v35 = vld [vmem:[#allocation2 + $0x10] sm:$0xff] }
  0x2b   :  { %v3492_v42 = vld [vmem:[#allocation5 + $0x380] sm:$0xf]  ;;  %v4584_v43 = vld [vmem:[#allocation5 + $0x38c] sm:$0xf0]  ;;  %v3365_v46 = vor.u32 %v4552_v41, %v3364_v40  ;;  %1323 = vmatpush.bf16.msra.mxu0 %v3109_v44  ;;  %v116_v40 = vld [vmem:[#allocation2] sm:$0xff] }
  0x2c   :  { %v3092_v47 = vld [vmem:[#allocation5 + $0x60] sm:$0xf]  ;;  %v4484_v48 = vld [vmem:[#allocation5 + $0x6c] sm:$0xf0]  ;;  %v3493_v50 = vor.u32 %v4584_v43, %v3492_v42  ;;  %1336 = vmatpush.bf16.msra.mxu1 %v3237_v45  ;;  %v4530_v43 = vld [vmem:[#allocation5 + $0x1e4] sm:$0xf] }
  0x2d   :  { %v3220_v49 = vld [vmem:[#allocation5 + $0x160] sm:$0xf]  ;;  %v4516_v51 = vld [vmem:[#allocation5 + $0x16c] sm:$0xf0]  ;;  %v3093_v56 = vor.u32 %v4484_v48, %v3092_v47  ;;  %1349 = vmatpush.bf16.msra.mxu2 %v3365_v46  ;;  %v3286_v44 = vld [vmem:[#allocation5 + $0x1f0] sm:$0xf0]  ;;  %v3161_v47 = vor.u32 %v4498_v33, %v3158_v34 }
  0x2e   :  { %v3348_v52 = vld [vmem:[#allocation5 + $0x260] sm:$0xf]  ;;  %v4548_v53 = vld [vmem:[#allocation5 + $0x26c] sm:$0xf0]  ;;  %v3221_v57 = vor.u32 %v4516_v51, %v3220_v49  ;;  %1362 = vmatpush.bf16.msra.mxu3 %v3493_v50  ;;  %v5089_v51 = vpack.c.bf16 %v118_v35, %v118_v35  ;;  %v4514_v35 = vld [vmem:[#allocation5 + $0x164] sm:$0xf] }
  0x2f   :  { %v3476_v54 = vld [vmem:[#allocation5 + $0x360] sm:$0xf]  ;;  %v4580_v55 = vld [vmem:[#allocation5 + $0x36c] sm:$0xf0]  ;;  %v3349_v58 = vor.u32 %v4548_v53, %v3348_v52  ;;  %1324 = vmatpush.bf16.msra.mxu0 %v3093_v56  ;;  %v4494_v53 = vld [vmem:[#allocation5 + $0xc4] sm:$0xf] }
  0x30   :  { %v3076_v59 = vld [vmem:[#allocation5 + $0x40] sm:$0xf]  ;;  %v4480_v60 = vld [vmem:[#allocation5 + $0x4c] sm:$0xf0]  ;;  %v3477_v62 = vor.u32 %v4580_v55, %v3476_v54  ;;  %1337 = vmatpush.bf16.msra.mxu1 %v3221_v57  ;;  %v3142_v54 = vld [vmem:[#allocation5 + $0xd0] sm:$0xf0]  ;;  %v5091_v55 = vpack.c.bf16 %v116_v40, %v116_v40 }
  0x31   :  { %v3204_v61 = vld [vmem:[#allocation5 + $0x140] sm:$0xf]  ;;  %v4512_v63 = vld [vmem:[#allocation5 + $0x14c] sm:$0xf0]  ;;  %v3077_v4 = vor.u32 %v4480_v60, %v3076_v59  ;;  %1350 = vmatpush.bf16.msra.mxu2 %v3349_v58  ;;  %v3289_v59 = vor.u32 %v4530_v43, %v3286_v44  ;;  %v4478_v43 = vld [vmem:[#allocation5 + $0x44] sm:$0xf] }
  0x32   :  { %v3332_v0 = vld [vmem:[#allocation5 + $0x240] sm:$0xf]  ;;  %v4544_v1 = vld [vmem:[#allocation5 + $0x24c] sm:$0xf0]  ;;  %v3205_v5 = vor.u32 %v4512_v63, %v3204_v61  ;;  %1363 = vmatpush.bf16.msra.mxu3 %v3477_v62  ;;  %v4526_v61 = vld [vmem:[#allocation5 + $0x1c4] sm:$0xf] }
  0x33   :  { %v3460_v2 = vld [vmem:[#allocation5 + $0x340] sm:$0xf]  ;;  %v4576_v3 = vld [vmem:[#allocation5 + $0x34c] sm:$0xf0]  ;;  %v3333_v6 = vor.u32 %v4544_v1, %v3332_v0  ;;  %1325 = vmatpush.bf16.msra.mxu0 %v3077_v4  ;;  %v3270_v62 = vld [vmem:[#allocation5 + $0x1d0] sm:$0xf0]  ;;  %v3145_v0 = vor.u32 %v4494_v53, %v3142_v54 }
  0x34   :  { %v3060_v7 = vld [vmem:[#allocation5 + $0x20] sm:$0xf]  ;;  %v4476_v8 = vld [vmem:[#allocation5 + $0x2c] sm:$0xf0]  ;;  %v3461_v10 = vor.u32 %v4576_v3, %v3460_v2  ;;  %1338 = vmatpush.bf16.msra.mxu1 %v3205_v5  ;;  %v4490_v5 = vld [vmem:[#allocation5 + $0xa4] sm:$0xf] }
  0x35   :  { %v3188_v9 = vld [vmem:[#allocation5 + $0x120] sm:$0xf]  ;;  %v4508_v11 = vld [vmem:[#allocation5 + $0x12c] sm:$0xf0]  ;;  %v3061_v16 = vor.u32 %v4476_v8, %v3060_v7  ;;  %1351 = vmatpush.bf16.msra.mxu2 %v3333_v6  ;;  %v3126_v6 = vld [vmem:[#allocation5 + $0xb0] sm:$0xf0]  ;;  %v3273_v8 = vor.u32 %v4526_v61, %v3270_v62 }
  0x36   :  { %v3316_v12 = vld [vmem:[#allocation5 + $0x220] sm:$0xf]  ;;  %v4540_v13 = vld [vmem:[#allocation5 + $0x22c] sm:$0xf0]  ;;  %v3189_v20 = vor.u32 %v4508_v11, %v3188_v9  ;;  %1364 = vmatpush.bf16.msra.mxu3 %v3461_v10  ;;  %v4522_v10 = vld [vmem:[#allocation5 + $0x1a4] sm:$0xf] }
  0x37   :  { %v3444_v14 = vld [vmem:[#allocation5 + $0x320] sm:$0xf]  ;;  %v4572_v15 = vld [vmem:[#allocation5 + $0x32c] sm:$0xf0]  ;;  %v3317_v21 = vor.u32 %v4540_v13, %v3316_v12  ;;  %1326 = vmatpush.bf16.msra.mxu0 %v3061_v16  ;;  %v3254_v11 = vld [vmem:[#allocation5 + $0x1b0] sm:$0xf0]  ;;  %v3129_v13 = vor.u32 %v4490_v5, %v3126_v6 }
  0x38   :  { %v3044_v17 = vld [vmem:[#allocation5] sm:$0xf]  ;;  %v4472_v18 = vld [vmem:[#allocation5 + $0xc] sm:$0xf0]  ;;  %v3445_v25 = vor.u32 %v4572_v15, %v3444_v14  ;;  %1339 = vmatpush.bf16.msra.mxu1 %v3189_v20  ;;  %v3257_v20 = vor.u32 %v4522_v10, %v3254_v11  ;;  %v3078_v44 = vld [vmem:[#allocation5 + $0x50] sm:$0xf0] }
  0x39   :  { %v3172_v19 = vld [vmem:[#allocation5 + $0x100] sm:$0xf]  ;;  %v4504_v22 = vld [vmem:[#allocation5 + $0x10c] sm:$0xf0]  ;;  %v3045_v32 = vor.u32 %v4472_v18, %v3044_v17  ;;  %1352 = vmatpush.bf16.msra.mxu2 %v3317_v21  ;;  %v4486_v18 = vld [vmem:[#allocation5 + $0x84] sm:$0xf] }
  0x3a   :  { %v3300_v23 = vld [vmem:[#allocation5 + $0x200] sm:$0xf]  ;;  %v4536_v24 = vld [vmem:[#allocation5 + $0x20c] sm:$0xf0]  ;;  %v3173_v36 = vor.u32 %v4504_v22, %v3172_v19  ;;  %1365 = vmatpush.bf16.msra.mxu3 %v3445_v25  ;;  %v3110_v19 = vld [vmem:[#allocation5 + $0x90] sm:$0xf0] }
  0x3b   :  { %v3428_v26 = vld [vmem:[#allocation5 + $0x300] sm:$0xf]  ;;  %v4568_v27 = vld [vmem:[#allocation5 + $0x30c] sm:$0xf0]  ;;  %v3301_v37 = vor.u32 %v4536_v24, %v3300_v23  ;;  %1327 = vmatpush.bf16.msra.mxu0 %v3045_v32  ;;  %v4518_v22 = vld [vmem:[#allocation5 + $0x184] sm:$0xf]  ;;  %v3113_v25 = vor.u32 %v4486_v18, %v3110_v19 }
  0x3c   :  { %v3668_v28 = vld [vmem:[#allocation5 + $0x4e0] sm:$0xf]  ;;  %v4628_v29 = vld [vmem:[#allocation5 + $0x4ec] sm:$0xf0]  ;;  %v3429_v41 = vor.u32 %v4568_v27, %v3428_v26  ;;  %1340 = vmatpush.bf16.msra.mxu1 %v3173_v36  ;;  %v3238_v23 = vld [vmem:[#allocation5 + $0x190] sm:$0xf0] }
  0x3d   :  { %v3796_v30 = vld [vmem:[#allocation5 + $0x5e0] sm:$0xf]  ;;  %v4660_v31 = vld [vmem:[#allocation5 + $0x5ec] sm:$0xf0]  ;;  %v3669_v42 = vor.u32 %v4628_v29, %v3668_v28  ;;  %1353 = vmatpush.bf16.msra.mxu2 %v3301_v37  ;;  %v122_v32 = vld [vmem:[#allocation2 + $0x30] sm:$0xff]  ;;  %v3241_v33 = vor.u32 %v4518_v22, %v3238_v23 }
  0x3e   :  { %v3812_v38 = vld [vmem:[#allocation5 + $0x600] sm:$0xf]  ;;  %v4664_v39 = vld [vmem:[#allocation5 + $0x60c] sm:$0xf0]  ;;  %v3797_v46 = vor.u32 %v4660_v31, %v3796_v30  ;;  %1366 = vmatpush.bf16.msra.mxu3 %v3429_v41  ;;  %1328 = vmatmul.bf16.vlgmr.msra.gmra.mxu0 %v5091_v55  ;;  %v4482_v30 = vld [vmem:[#allocation5 + $0x64] sm:$0xf] }
  0x3f   :  { %v119_v45 = vld [vmem:[#allocation2 + $0x18] sm:$0xff]  ;;  %v4624_v49 = vld [vmem:[#allocation5 + $0x4cc] sm:$0xf0]  ;;  %v3813_v56 = vor.u32 %v4664_v39, %v3812_v38  ;;  %1372 = vmatpush.bf16.msrb.mxu0 %v3669_v42  ;;  %v3094_v31 = vld [vmem:[#allocation5 + $0x70] sm:$0xf0] }
  0x40   :  { %v3652_v48 = vld [vmem:[#allocation5 + $0x4c0] sm:$0xf]  ;;  %v4656_v52 = vld [vmem:[#allocation5 + $0x5cc] sm:$0xf0]  ;;  %v5093_v57 = vpack.c.bf16 %v119_v45, %v119_v45  ;;  %1385 = vmatpush.bf16.msrb.mxu1 %v3797_v46  ;;  %1354 = vmatmul.bf16.vlgmr.msra.gmra.mxu2 %v5089_v51  ;;  %v3222_v36 = vld [vmem:[#allocation5 + $0x170] sm:$0xf0]  ;;  %v3097_v38 = vor.u32 %v4482_v30, %v3094_v31  ;;  %v5101_v45 = vpack.c.bf16 %v122_v32, %v122_v32 }
  0x41   :  { %v3780_v50 = vld [vmem:[#allocation5 + $0x5c0] sm:$0xf]  ;;  %v117_v58 = vld [vmem:[#allocation2 + $0x8] sm:$0xff]  ;;  %v3653_v60 = vor.u32 %v4624_v49, %v3652_v48  ;;  %1405 = vmatpush.bf16.msrb.mxu2 %v3813_v56  ;;  %v3225_v46 = vor.u32 %v4514_v35, %v3222_v36  ;;  %v4510_v48 = vld [vmem:[#allocation5 + $0x144] sm:$0xf] }
  0x42   :  { %1411 = vmatpush.bf16.msrb.mxu3 %v3161_v47  ;;  %v3781_v63 = vor.u32 %v4656_v52, %v3780_v50  ;;  %v3636_v1 = vld [vmem:[#allocation5 + $0x4a0] sm:$0xf]  ;;  %v4620_v2 = vld [vmem:[#allocation5 + $0x4ac] sm:$0xf0]  ;;  %v5097_v7 = vpack.c.bf16 %v117_v58, %v117_v58  ;;  %v3206_v49 = vld [vmem:[#allocation5 + $0x150] sm:$0xf0]  ;;  %v3081_v52 = vor.u32 %v4478_v43, %v3078_v44 }
  0x43   :  { %v3764_v3 = vld [vmem:[#allocation5 + $0x5a0] sm:$0xf]  ;;  %v4652_v4 = vld [vmem:[#allocation5 + $0x5ac] sm:$0xf0]  ;;  %1367 = vmatmul.bf16.vlgmr.msra.gmra.mxu3 %v5093_v57  ;;  %1373 = vmatpush.bf16.msrb.mxu0 %v3653_v60  ;;  %v3637_v9 = vor.u32 %v4620_v2, %v3636_v1  ;;  %v3062_v60 = vld [vmem:[#allocation5 + $0x30] sm:$0xf0]  ;;  %v3209_v61 = vor.u32 %v4510_v48, %v3206_v49 }
  0x44   :  { %1386 = vmatpush.bf16.msrb.mxu1 %v3781_v63  ;;  %v3765_v12 = vor.u32 %v4652_v4, %v3764_v3  ;;  %v3620_v14 = vld [vmem:[#allocation5 + $0x480] sm:$0xf]  ;;  %v4616_v15 = vld [vmem:[#allocation5 + $0x48c] sm:$0xf0]  ;;  %v4506_v63 = vld [vmem:[#allocation5 + $0x124] sm:$0xf] }
  0x45   :  { %1424 = vmatpush.bf16.msra.mxu2 %v3289_v59  ;;  %v3748_v16 = vld [vmem:[#allocation5 + $0x580] sm:$0xf]  ;;  %1341 = vmatmul.bf16.vlgmr.msra.gmra.mxu1 %v5097_v7  ;;  %v4648_v17 = vld [vmem:[#allocation5 + $0x58c] sm:$0xf0]  ;;  %v3621_v21 = vor.u32 %v4616_v15, %v3620_v14  ;;  %v4474_v59 = vld [vmem:[#allocation5 + $0x24] sm:$0xf] }
  0x46   :  { %1412 = vmatpush.bf16.msrb.mxu3 %v3145_v0  ;;  %v3749_v24 = vor.u32 %v4648_v17, %v3748_v16  ;;  %v3604_v26 = vld [vmem:[#allocation5 + $0x460] sm:$0xf]  ;;  %v4612_v27 = vld [vmem:[#allocation5 + $0x46c] sm:$0xf0]  ;;  %v3190_v0 = vld [vmem:[#allocation5 + $0x130] sm:$0xf0]  ;;  %v3065_v3 = vor.u32 %v4474_v59, %v3062_v60 }
  0x47   :  { %1374 = vmatpush.bf16.msrb.mxu0 %v3637_v9  ;;  %v3732_v28 = vld [vmem:[#allocation5 + $0x560] sm:$0xf]  ;;  %v4644_v29 = vld [vmem:[#allocation5 + $0x56c] sm:$0xf0]  ;;  %v3605_v34 = vor.u32 %v4612_v27, %v3604_v26  ;;  %v3046_v9 = vld [vmem:[#allocation5 + $0x10] sm:$0xf0]  ;;  %v3193_v14 = vor.u32 %v4506_v63, %v3190_v0 }
  0x48   :  { %1387 = vmatpush.bf16.msrb.mxu1 %v3765_v12  ;;  %v3733_v37 = vor.u32 %v4644_v29, %v3732_v28  ;;  %v3588_v39 = vld [vmem:[#allocation5 + $0x440] sm:$0xf]  ;;  %v4608_v40 = vld [vmem:[#allocation5 + $0x44c] sm:$0xf0]  ;;  %v4562_v10 = vld [vmem:[#allocation5 + $0x2e4] sm:$0xf] }
  0x49   :  { %1425 = vmatpush.bf16.msra.mxu2 %v3273_v8  ;;  %v3716_v41 = vld [vmem:[#allocation5 + $0x540] sm:$0xf]  ;;  %v4640_v42 = vld [vmem:[#allocation5 + $0x54c] sm:$0xf0]  ;;  %v3589_v47 = vor.u32 %v4608_v40, %v3588_v39  ;;  %v4470_v8 = vld [vmem:[#allocation5 + $0x4] sm:$0xf] }
  0x4a   :  { %1413 = vmatpush.bf16.msrb.mxu3 %v3129_v13  ;;  %v3717_v50 = vor.u32 %v4640_v42, %v3716_v41  ;;  %v3572_v53 = vld [vmem:[#allocation5 + $0x420] sm:$0xf]  ;;  %v4604_v54 = vld [vmem:[#allocation5 + $0x42c] sm:$0xf0]  ;;  %v3414_v11 = vld [vmem:[#allocation5 + $0x2f0] sm:$0xf0] }
  0x4b   :  { %1375 = vmatpush.bf16.msrb.mxu0 %v3621_v21  ;;  %v3700_v56 = vld [vmem:[#allocation5 + $0x520] sm:$0xf]  ;;  %v4636_v58 = vld [vmem:[#allocation5 + $0x52c] sm:$0xf0]  ;;  %v3573_v62 = vor.u32 %v4604_v54, %v3572_v53  ;;  %v4594_v12 = vld [vmem:[#allocation5 + $0x3e4] sm:$0xf] }
  0x4c   :  { %1388 = vmatpush.bf16.msrb.mxu1 %v3749_v24  ;;  %v3556_v1 = vld [vmem:[#allocation5 + $0x400] sm:$0xf]  ;;  %v3701_v2 = vor.u32 %v4636_v58, %v3700_v56  ;;  %v4600_v4 = vld [vmem:[#allocation5 + $0x40c] sm:$0xf0]  ;;  %v3542_v13 = vld [vmem:[#allocation5 + $0x3f0] sm:$0xf0]  ;;  %v3417_v24 = vor.u32 %v4562_v10, %v3414_v11 }
  0x4d   :  { %1426 = vmatpush.bf16.msra.mxu2 %v3257_v20  ;;  %v3684_v5 = vld [vmem:[#allocation5 + $0x500] sm:$0xf]  ;;  %v4632_v6 = vld [vmem:[#allocation5 + $0x50c] sm:$0xf0]  ;;  %v3557_v15 = vor.u32 %v4600_v4, %v3556_v1  ;;  %v4626_v16 = vld [vmem:[#allocation5 + $0x4e4] sm:$0xf]  ;;  %v3049_v20 = vor.u32 %v4470_v8, %v3046_v9 }
  0x4e   :  { %1414 = vmatpush.bf16.msrb.mxu3 %v3113_v25  ;;  %v3670_v17 = vld [vmem:[#allocation5 + $0x4f0] sm:$0xf0]  ;;  %v120_v18 = vld [vmem:[#allocation2 + $0x20] sm:$0xff]  ;;  %v3685_v19 = vor.u32 %v4632_v6, %v3684_v5  ;;  %v4502_v21 = vld [vmem:[#allocation5 + $0x104] sm:$0xf]  ;;  %v3545_v25 = vor.u32 %v4594_v12, %v3542_v13 }
  0x4f   :  { %1376 = vmatpush.bf16.msrb.mxu0 %v3605_v34  ;;  %v3174_v22 = vld [vmem:[#allocation5 + $0x110] sm:$0xf0]  ;;  %v4658_v26 = vld [vmem:[#allocation5 + $0x5e4] sm:$0xf]  ;;  %v3673_v29 = vor.u32 %v4626_v16, %v3670_v17  ;;  %v5105_v30 = vpack.c.bf16 %v120_v18, %v120_v18 }
  0x50   :  { %1389 = vmatpush.bf16.msrb.mxu1 %v3733_v37  ;;  %3826 = vmatmul.msk.bf16.vlgmr.msrb.gmra.mxu2 %vm1316_vm0, %v5101_v45  ;;  %v121_v23 = vld [vmem:[#allocation2 + $0x28] sm:$0xff]  ;;  %v4558_v28 = vld [vmem:[#allocation5 + $0x2c4] sm:$0xf]  ;;  %v3177_v34 = vor.u32 %v4502_v21, %v3174_v22 }
  0x51   :  { %1427 = vmatpush.bf16.msra.mxu2 %v3241_v33  ;;  %v3798_v27 = vld [vmem:[#allocation5 + $0x5f0] sm:$0xf0]  ;;  %v4590_v32 = vld [vmem:[#allocation5 + $0x3c4] sm:$0xf]  ;;  %v5107_v35 = vpack.c.bf16 %v121_v23, %v121_v23 }
  0x52   :  { %1415 = vmatpush.bf16.msrb.mxu3 %v3097_v38  ;;  %v3398_v31 = vld [vmem:[#allocation5 + $0x2d0] sm:$0xf0]  ;;  %v4622_v36 = vld [vmem:[#allocation5 + $0x4c4] sm:$0xf]  ;;  %v3801_v38 = vor.u32 %v4658_v26, %v3798_v27 }
  0x53   :  { %1377 = vmatpush.bf16.msrb.mxu0 %v3589_v47  ;;  %v3526_v33 = vld [vmem:[#allocation5 + $0x3d0] sm:$0xf0]  ;;  %v3401_v39 = vor.u32 %v4558_v28, %v3398_v31  ;;  %v4654_v41 = vld [vmem:[#allocation5 + $0x5c4] sm:$0xf] }
  0x54   :  { %1390 = vmatpush.bf16.msrb.mxu1 %v3717_v50  ;;  %v3654_v37 = vld [vmem:[#allocation5 + $0x4d0] sm:$0xf0]  ;;  %v3529_v40 = vor.u32 %v4590_v32, %v3526_v33  ;;  %v4554_v43 = vld [vmem:[#allocation5 + $0x2a4] sm:$0xf] }
  0x55   :  { %1428 = vmatpush.bf16.msra.mxu2 %v3225_v46  ;;  %v3782_v42 = vld [vmem:[#allocation5 + $0x5d0] sm:$0xf0]  ;;  %v3657_v44 = vor.u32 %v4622_v36, %v3654_v37  ;;  %v4586_v47 = vld [vmem:[#allocation5 + $0x3a4] sm:$0xf] }
  0x56   :  { %1416 = vmatpush.bf16.msrb.mxu3 %v3081_v52  ;;  %v3382_v46 = vld [vmem:[#allocation5 + $0x2b0] sm:$0xf0]  ;;  %v4618_v49 = vld [vmem:[#allocation5 + $0x4a4] sm:$0xf]  ;;  %v3785_v52 = vor.u32 %v4654_v41, %v3782_v42 }
  0x57   :  { %1378 = vmatpush.bf16.msrb.mxu0 %v3573_v62  ;;  %v3510_v48 = vld [vmem:[#allocation5 + $0x3b0] sm:$0xf0]  ;;  %v3385_v53 = vor.u32 %v4554_v43, %v3382_v46  ;;  %v4650_v56 = vld [vmem:[#allocation5 + $0x5a4] sm:$0xf] }
  0x58   :  { %1391 = vmatpush.bf16.msrb.mxu1 %v3701_v2  ;;  %v3638_v50 = vld [vmem:[#allocation5 + $0x4b0] sm:$0xf0]  ;;  %v3513_v54 = vor.u32 %v4586_v47, %v3510_v48  ;;  %v4550_v59 = vld [vmem:[#allocation5 + $0x284] sm:$0xf] }
  0x59   :  { %1429 = vmatpush.bf16.msra.mxu2 %v3209_v61  ;;  %v3766_v58 = vld [vmem:[#allocation5 + $0x5b0] sm:$0xf0]  ;;  %v3641_v60 = vor.u32 %v4618_v49, %v3638_v50  ;;  %v4582_v62 = vld [vmem:[#allocation5 + $0x384] sm:$0xf] }
  0x5a   :  { %1417 = vmatpush.bf16.msrb.mxu3 %v3065_v3  ;;  %v3366_v61 = vld [vmem:[#allocation5 + $0x290] sm:$0xf0]  ;;  %v4614_v0 = vld [vmem:[#allocation5 + $0x484] sm:$0xf]  ;;  %v3769_v2 = vor.u32 %v4650_v56, %v3766_v58  ;;  %v3164_v56 = vld [vmem:[#allocation5 + $0xe8] sm:$0xf] }
  0x5b   :  { %1379 = vmatpush.bf16.msrb.mxu0 %v3557_v15  ;;  %v3494_v63 = vld [vmem:[#allocation5 + $0x390] sm:$0xf0]  ;;  %v3369_v3 = vor.u32 %v4550_v59, %v3366_v61  ;;  %v4646_v5 = vld [vmem:[#allocation5 + $0x584] sm:$0xf]  ;;  %v4501_v58 = vld [vmem:[#allocation5 + $0xf4] sm:$0xf0] }
  0x5c   :  { %1392 = vmatpush.bf16.msrb.mxu1 %v3685_v19  ;;  %v3622_v1 = vld [vmem:[#allocation5 + $0x490] sm:$0xf0]  ;;  %v3497_v4 = vor.u32 %v4582_v62, %v3494_v63  ;;  %v4546_v8 = vld [vmem:[#allocation5 + $0x264] sm:$0xf]  ;;  %v3420_v62 = vld [vmem:[#allocation5 + $0x2e8] sm:$0xf] }
  0x5d   :  { %1430 = vmatpush.bf16.msra.mxu2 %v3193_v14  ;;  %v3750_v6 = vld [vmem:[#allocation5 + $0x590] sm:$0xf0]  ;;  %v3625_v9 = vor.u32 %v4614_v0, %v3622_v1  ;;  %v4578_v11 = vld [vmem:[#allocation5 + $0x364] sm:$0xf]  ;;  %v4565_v63 = vld [vmem:[#allocation5 + $0x2f4] sm:$0xf0] }
  0x5e   :  { %1418 = vmatpush.bf16.msrb.mxu3 %v3049_v20  ;;  %1380 = vmatmul.bf16.vlgmr.msrb.gmra.mxu0 %v5105_v30  ;;  %v3350_v10 = vld [vmem:[#allocation5 + $0x270] sm:$0xf0]  ;;  %v4610_v13 = vld [vmem:[#allocation5 + $0x464] sm:$0xf]  ;;  %v3753_v15 = vor.u32 %v4646_v5, %v3750_v6  ;;  %v3165_v5 = vor.u32 %v4501_v58, %v3164_v56  ;;  %v3548_v6 = vld [vmem:[#allocation5 + $0x3e8] sm:$0xf] }
  0x5f   :  { %1437 = vmatpush.bf16.msra.mxu0 %v3417_v24  ;;  %1393 = vmatmul.bf16.vlgmr.msrb.gmra.mxu1 %v5107_v35  ;;  %v3478_v12 = vld [vmem:[#allocation5 + $0x370] sm:$0xf0]  ;;  %v3353_v16 = vor.u32 %v4546_v8, %v3350_v10  ;;  %v4642_v18 = vld [vmem:[#allocation5 + $0x564] sm:$0xf]  ;;  %v4597_v8 = vld [vmem:[#allocation5 + $0x3f4] sm:$0xf0] }
  0x60   :  { %1450 = vmatpush.bf16.msra.mxu1 %v3545_v25  ;;  %v3606_v14 = vld [vmem:[#allocation5 + $0x470] sm:$0xf0]  ;;  %v3481_v17 = vor.u32 %v4578_v11, %v3478_v12  ;;  %v4542_v20 = vld [vmem:[#allocation5 + $0x244] sm:$0xf]  ;;  %v3292_v10 = vld [vmem:[#allocation5 + $0x1e8] sm:$0xf]  ;;  %v3421_v12 = vor.u32 %v4565_v63, %v3420_v62 }
  0x61   :  { %1431 = vmatpush.bf16.msra.mxu2 %v3177_v34  ;;  %1419 = vmatmul.bf16.vlgmr.msrb.gmra.mxu3 %v5091_v55  ;;  %v3734_v19 = vld [vmem:[#allocation5 + $0x570] sm:$0xf0]  ;;  %v3609_v21 = vor.u32 %v4610_v13, %v3606_v14  ;;  %v4574_v23 = vld [vmem:[#allocation5 + $0x344] sm:$0xf]  ;;  %v4533_v11 = vld [vmem:[#allocation5 + $0x1f4] sm:$0xf0] }
  0x62   :  { %1463 = vmatpush.bf16.msra.mxu3 %v3673_v29  ;;  %v3334_v22 = vld [vmem:[#allocation5 + $0x250] sm:$0xf0]  ;;  %v4606_v25 = vld [vmem:[#allocation5 + $0x444] sm:$0xf]  ;;  %v3737_v27 = vor.u32 %v4642_v18, %v3734_v19  ;;  %v3148_v14 = vld [vmem:[#allocation5 + $0xc8] sm:$0xf]  ;;  %v3293_v19 = vor.u32 %v4533_v11, %v3292_v10 }
  0x63   :  { %1438 = vmatpush.bf16.msra.mxu0 %v3401_v39  ;;  %v3462_v24 = vld [vmem:[#allocation5 + $0x350] sm:$0xf0]  ;;  %v3337_v28 = vor.u32 %v4542_v20, %v3334_v22  ;;  %v4638_v31 = vld [vmem:[#allocation5 + $0x544] sm:$0xf]  ;;  %v4561_v18 = vld [vmem:[#allocation5 + $0x2d4] sm:$0xf0] }
  0x64   :  { %1451 = vmatpush.bf16.msra.mxu1 %v3529_v40  ;;  %1432 = vmatmul.bf16.vlgmr.msra.gmra.mxu2 %v5097_v7  ;;  %v3590_v26 = vld [vmem:[#allocation5 + $0x450] sm:$0xf0]  ;;  %v3465_v29 = vor.u32 %v4574_v23, %v3462_v24  ;;  %v4538_v33 = vld [vmem:[#allocation5 + $0x224] sm:$0xf]  ;;  %v3532_v20 = vld [vmem:[#allocation5 + $0x3c8] sm:$0xf] }
  0x65   :  { %1476 = vmatpush.bf16.msrb.mxu2 %v3801_v38  ;;  %v3718_v32 = vld [vmem:[#allocation5 + $0x550] sm:$0xf0]  ;;  %v3593_v34 = vor.u32 %v4606_v25, %v3590_v26  ;;  %v4570_v37 = vld [vmem:[#allocation5 + $0x324] sm:$0xf]  ;;  %v3276_v23 = vld [vmem:[#allocation5 + $0x1c8] sm:$0xf] }
  0x66   :  { %1464 = vmatpush.bf16.msra.mxu3 %v3657_v44  ;;  %v3318_v36 = vld [vmem:[#allocation5 + $0x230] sm:$0xf0]  ;;  %v4602_v39 = vld [vmem:[#allocation5 + $0x424] sm:$0xf]  ;;  %v3721_v41 = vor.u32 %v4638_v31, %v3718_v32  ;;  %v4529_v24 = vld [vmem:[#allocation5 + $0x1d4] sm:$0xf0] }
  0x67   :  { %1439 = vmatpush.bf16.msra.mxu0 %v3385_v53  ;;  %v3446_v38 = vld [vmem:[#allocation5 + $0x330] sm:$0xf0]  ;;  %v4634_v42 = vld [vmem:[#allocation5 + $0x524] sm:$0xf]  ;;  %v3321_v46 = vor.u32 %v4538_v33, %v3318_v36  ;;  %v3132_v26 = vld [vmem:[#allocation5 + $0xa8] sm:$0xf]  ;;  %v3277_v32 = vor.u32 %v4529_v24, %v3276_v23 }
  0x68   :  { %1452 = vmatpush.bf16.msra.mxu1 %v3513_v54  ;;  %v3574_v40 = vld [vmem:[#allocation5 + $0x430] sm:$0xf0]  ;;  %v4534_v44 = vld [vmem:[#allocation5 + $0x204] sm:$0xf]  ;;  %v3449_v47 = vor.u32 %v4570_v37, %v3446_v38  ;;  %v4557_v31 = vld [vmem:[#allocation5 + $0x2b4] sm:$0xf0] }
  0x69   :  { %1477 = vmatpush.bf16.msrb.mxu2 %v3785_v52  ;;  %v3702_v43 = vld [vmem:[#allocation5 + $0x530] sm:$0xf0]  ;;  %v4566_v49 = vld [vmem:[#allocation5 + $0x304] sm:$0xf]  ;;  %v3577_v52 = vor.u32 %v4602_v39, %v3574_v40  ;;  %v3516_v33 = vld [vmem:[#allocation5 + $0x3a8] sm:$0xf] }
  0x6a   :  { %1465 = vmatpush.bf16.msra.mxu3 %v3641_v60  ;;  %v3302_v48 = vld [vmem:[#allocation5 + $0x210] sm:$0xf0]  ;;  %v4598_v53 = vld [vmem:[#allocation5 + $0x404] sm:$0xf]  ;;  %v3705_v60 = vor.u32 %v4634_v42, %v3702_v43  ;;  %v3260_v37 = vld [vmem:[#allocation5 + $0x1a8] sm:$0xf] }
  0x6b   :  { %1440 = vmatpush.bf16.msra.mxu0 %v3369_v3  ;;  %v3430_v50 = vld [vmem:[#allocation5 + $0x310] sm:$0xf0]  ;;  %v4662_v59 = vld [vmem:[#allocation5 + $0x604] sm:$0xf]  ;;  %v3305_v0 = vor.u32 %v4534_v44, %v3302_v48  ;;  %v4525_v38 = vld [vmem:[#allocation5 + $0x1b4] sm:$0xf0] }
  0x6c   :  { %1453 = vmatpush.bf16.msra.mxu1 %v3497_v4  ;;  %v3558_v54 = vld [vmem:[#allocation5 + $0x410] sm:$0xf0]  ;;  %v3433_v1 = vor.u32 %v4566_v49, %v3430_v50  ;;  %v3116_v40 = vld [vmem:[#allocation5 + $0x88] sm:$0xf]  ;;  %v4553_v44 = vld [vmem:[#allocation5 + $0x294] sm:$0xf0] }
  0x6d   :  { %1478 = vmatpush.bf16.msrb.mxu2 %v3769_v2  ;;  %v3814_v61 = vld [vmem:[#allocation5 + $0x610] sm:$0xf0]  ;;  %v4630_v2 = vld [vmem:[#allocation5 + $0x504] sm:$0xf]  ;;  %v3561_v4 = vor.u32 %v4598_v53, %v3558_v54  ;;  %v3372_v43 = vld [vmem:[#allocation5 + $0x288] sm:$0xf] }
  0x6e   :  { %1466 = vmatpush.bf16.msra.mxu3 %v3625_v9  ;;  %v3686_v3 = vld [vmem:[#allocation5 + $0x510] sm:$0xf0]  ;;  %v3817_v9 = vor.u32 %v4662_v59, %v3814_v61  ;;  %v4585_v48 = vld [vmem:[#allocation5 + $0x394] sm:$0xf0]  ;;  %v3244_v50 = vld [vmem:[#allocation5 + $0x188] sm:$0xf]  ;;  %v3373_v53 = vor.u32 %v4553_v44, %v3372_v43 }
  0x6f   :  { %1441 = vmatpush.bf16.msra.mxu0 %v3353_v16  ;;  %v3689_v13 = vor.u32 %v4630_v2, %v3686_v3  ;;  %v3549_v16 = vor.u32 %v4597_v8, %v3548_v6  ;;  %v3100_v54 = vld [vmem:[#allocation5 + $0x68] sm:$0xf]  ;;  %v4485_v56 = vld [vmem:[#allocation5 + $0x74] sm:$0xf0] }
  0x70   :  { %1454 = vmatpush.bf16.msra.mxu1 %v3481_v17  ;;  %v3404_v17 = vld [vmem:[#allocation5 + $0x2c8] sm:$0xf]  ;;  %v4581_v63 = vld [vmem:[#allocation5 + $0x374] sm:$0xf0] }
  0x71   :  { %1479 = vmatpush.bf16.msrb.mxu2 %v3753_v15  ;;  %v4497_v15 = vld [vmem:[#allocation5 + $0xd4] sm:$0xf0]  ;;  %v3405_v25 = vor.u32 %v4561_v18, %v3404_v17  ;;  %v3356_v59 = vld [vmem:[#allocation5 + $0x268] sm:$0xf] }
  0x72   :  { %1467 = vmatpush.bf16.msra.mxu3 %v3609_v21  ;;  %v4593_v21 = vld [vmem:[#allocation5 + $0x3d4] sm:$0xf0]  ;;  %v3149_v22 = vor.u32 %v4497_v15, %v3148_v14  ;;  %v3484_v62 = vld [vmem:[#allocation5 + $0x368] sm:$0xf] }
  0x73   :  { %1442 = vmatpush.bf16.msra.mxu0 %v3337_v28  ;;  %v3533_v28 = vor.u32 %v4593_v21, %v3532_v20  ;;  %v4517_v2 = vld [vmem:[#allocation5 + $0x174] sm:$0xf0]  ;;  %v3485_v6 = vor.u32 %v4581_v63, %v3484_v62  ;;  %v3340_v8 = vld [vmem:[#allocation5 + $0x248] sm:$0xf] }
  0x74   :  { %1455 = vmatpush.bf16.msra.mxu1 %v3465_v29  ;;  %v3388_v29 = vld [vmem:[#allocation5 + $0x2a8] sm:$0xf]  ;;  %v4513_v15 = vld [vmem:[#allocation5 + $0x154] sm:$0xf0] }
  0x75   :  { %1480 = vmatpush.bf16.msrb.mxu2 %v3737_v27  ;;  %v4493_v27 = vld [vmem:[#allocation5 + $0xb4] sm:$0xf0]  ;;  %v3389_v39 = vor.u32 %v4557_v31, %v3388_v29  ;;  %v3468_v11 = vld [vmem:[#allocation5 + $0x348] sm:$0xf] }
  0x76   :  { %1468 = vmatpush.bf16.msra.mxu3 %v3593_v34  ;;  %v4589_v34 = vld [vmem:[#allocation5 + $0x3b4] sm:$0xf0]  ;;  %v3133_v36 = vor.u32 %v4493_v27, %v3132_v26  ;;  %v3212_v14 = vld [vmem:[#allocation5 + $0x148] sm:$0xf] }
  0x77   :  { %1443 = vmatpush.bf16.msra.mxu0 %v3321_v46  ;;  %v3517_v42 = vor.u32 %v4589_v34, %v3516_v33  ;;  %v3261_v46 = vor.u32 %v4525_v38, %v3260_v37  ;;  %v3068_v17 = vld [vmem:[#allocation5 + $0x28] sm:$0xf]  ;;  %v4477_v18 = vld [vmem:[#allocation5 + $0x34] sm:$0xf0] }
  0x78   :  { %1456 = vmatpush.bf16.msra.mxu1 %v3449_v47  ;;  %v3500_v47 = vld [vmem:[#allocation5 + $0x388] sm:$0xf]  ;;  %v4541_v21 = vld [vmem:[#allocation5 + $0x234] sm:$0xf0] }
  0x79   :  { %1481 = vmatpush.bf16.msrb.mxu2 %v3721_v41  ;;  %v4489_v41 = vld [vmem:[#allocation5 + $0x94] sm:$0xf0]  ;;  %v3501_v58 = vor.u32 %v4585_v48, %v3500_v47  ;;  %v3324_v20 = vld [vmem:[#allocation5 + $0x228] sm:$0xf]  ;;  %v4499_v47 = vld [vmem:[#allocation5 + $0xec] sm:$0xf] }
  0x7a   :  { %1469 = vmatpush.bf16.msra.mxu3 %v3577_v52  ;;  %v3117_v49 = vor.u32 %v4489_v41, %v3116_v40  ;;  %v4521_v52 = vld [vmem:[#allocation5 + $0x194] sm:$0xf0]  ;;  %v3452_v23 = vld [vmem:[#allocation5 + $0x328] sm:$0xf]  ;;  %v3325_v29 = vor.u32 %v4541_v21, %v3324_v20  ;;  %v3166_v48 = vld [vmem:[#allocation5 + $0xf8] sm:$0xf0] }
  0x7b   :  { %1444 = vmatpush.bf16.msra.mxu0 %v3305_v0  ;;  %v3245_v61 = vor.u32 %v4521_v52, %v3244_v50  ;;  %v3101_v0 = vor.u32 %v4485_v56, %v3100_v54  ;;  %v4573_v24 = vld [vmem:[#allocation5 + $0x334] sm:$0xf0]  ;;  %v3196_v26 = vld [vmem:[#allocation5 + $0x128] sm:$0xf]  ;;  %v3169_v63 = vor.u32 %v4499_v47, %v3166_v48 }
  0x7c   :  { %1457 = vmatpush.bf16.msra.mxu1 %v3433_v1  ;;  %v3228_v1 = vld [vmem:[#allocation5 + $0x168] sm:$0xf]  ;;  %v4509_v27 = vld [vmem:[#allocation5 + $0x134] sm:$0xf0]  ;;  %v3453_v34 = vor.u32 %v4573_v24, %v3452_v23  ;;  %v3262_v23 = vld [vmem:[#allocation5 + $0x1b8] sm:$0xf0] }
  0x7d   :  { %1482 = vmatpush.bf16.msrb.mxu2 %v3705_v60  ;;  %v4549_v60 = vld [vmem:[#allocation5 + $0x274] sm:$0xf0]  ;;  %v3229_v10 = vor.u32 %v4517_v2, %v3228_v1  ;;  %v3308_v37 = vld [vmem:[#allocation5 + $0x208] sm:$0xf]  ;;  %v3197_v40 = vor.u32 %v4509_v27, %v3196_v26  ;;  %v4495_v1 = vld [vmem:[#allocation5 + $0xcc] sm:$0xf] }
  0x7e   :  { %1470 = vmatpush.bf16.msra.mxu3 %v3561_v4  ;;  %1445 = vmatmul.bf16.vlgmr.msra.gmra.mxu0 %v5089_v51  ;;  %v3357_v3 = vor.u32 %v4549_v60, %v3356_v59  ;;  %v3084_v4 = vld [vmem:[#allocation5 + $0x48] sm:$0xf]  ;;  %v4473_v31 = vld [vmem:[#allocation5 + $0x14] sm:$0xf0]  ;;  %v4531_v60 = vld [vmem:[#allocation5 + $0x1ec] sm:$0xf] }
  0x7f   :  { %1528 = vmatpush.bf16.msrb.mxu0 %v3421_v12  ;;  %1458 = vmatmul.bf16.vlgmr.msra.gmra.mxu1 %v5093_v57  ;;  %v4577_v12 = vld [vmem:[#allocation5 + $0x354] sm:$0xf0]  ;;  %v3804_v52 = vld [vmem:[#allocation5 + $0x5e8] sm:$0xf]  ;;  %v3150_v2 = vld [vmem:[#allocation5 + $0xd8] sm:$0xf0] }
  0x80   :  { %1502 = vmatpush.bf16.msrb.mxu1 %v3165_v5  ;;  %v4481_v5 = vld [vmem:[#allocation5 + $0x54] sm:$0xf0]  ;;  %v3660_v54 = vld [vmem:[#allocation5 + $0x4c8] sm:$0xf]  ;;  %v4487_v26 = vld [vmem:[#allocation5 + $0x8c] sm:$0xf] }
  0x81   :  { %1483 = vmatpush.bf16.msrb.mxu2 %v3689_v13  ;;  %1471 = vmatmul.bf16.vlgmr.msra.gmra.mxu3 %v5105_v30  ;;  %v3085_v13 = vor.u32 %v4481_v5, %v3084_v4  ;;  %v4629_v33 = vld [vmem:[#allocation5 + $0x4f4] sm:$0xf0]  ;;  %v3788_v5 = vld [vmem:[#allocation5 + $0x5c8] sm:$0xf]  ;;  %v3118_v27 = vld [vmem:[#allocation5 + $0x98] sm:$0xf0] }
  0x82   :  { %1496 = vmatpush.bf16.msrb.mxu3 %v3817_v9  ;;  %v4545_v9 = vld [vmem:[#allocation5 + $0x254] sm:$0xf0]  ;;  %v3628_v20 = vld [vmem:[#allocation5 + $0x488] sm:$0xf] }
  0x83   :  { %1529 = vmatpush.bf16.msrb.mxu0 %v3405_v25  ;;  %v3069_v25 = vor.u32 %v4477_v18, %v3068_v17  ;;  %v4537_v38 = vld [vmem:[#allocation5 + $0x214] sm:$0xf0]  ;;  %v3772_v18 = vld [vmem:[#allocation5 + $0x5a8] sm:$0xf] }
  0x84   :  { %1503 = vmatpush.bf16.msrb.mxu1 %v3149_v22  ;;  %1484 = vmatmul.bf16.vlgmr.msrb.gmra.mxu2 %v5107_v35  ;;  %v3213_v22 = vor.u32 %v4513_v15, %v3212_v14  ;;  %v4569_v41 = vld [vmem:[#allocation5 + $0x314] sm:$0xf0]  ;;  %v3309_v50 = vor.u32 %v4537_v38, %v3308_v37  ;;  %v4491_v14 = vld [vmem:[#allocation5 + $0xac] sm:$0xf]  ;;  %v3134_v15 = vld [vmem:[#allocation5 + $0xb8] sm:$0xf0]  ;;  %v3121_v38 = vor.u32 %v4487_v26, %v3118_v27 }
  0x85   :  { %1541 = vmatpush.bf16.msra.mxu2 %v3549_v16  ;;  %v3341_v16 = vor.u32 %v4545_v9, %v3340_v8  ;;  %v4665_v43 = vld [vmem:[#allocation5 + $0x614] sm:$0xf0]  ;;  %v3644_v8 = vld [vmem:[#allocation5 + $0x4a8] sm:$0xf]  ;;  %v3137_v24 = vor.u32 %v4491_v14, %v3134_v15  ;;  %v3246_v37 = vld [vmem:[#allocation5 + $0x198] sm:$0xf0] }
  0x86   :  { %1515 = vmatpush.bf16.msra.mxu3 %v3293_v19  ;;  %v3469_v19 = vor.u32 %v4577_v12, %v3468_v11  ;;  %v4621_v9 = vld [vmem:[#allocation5 + $0x4b4] sm:$0xf0]  ;;  %v3278_v11 = vld [vmem:[#allocation5 + $0x1d8] sm:$0xf0]  ;;  %v3153_v12 = vor.u32 %v4495_v1, %v3150_v2  ;;  %v3596_v47 = vld [vmem:[#allocation5 + $0x448] sm:$0xf] }
  0x87   :  { %1530 = vmatpush.bf16.msrb.mxu0 %v3389_v39  ;;  %v3436_v39 = vld [vmem:[#allocation5 + $0x308] sm:$0xf]  ;;  %v4617_v21 = vld [vmem:[#allocation5 + $0x494] sm:$0xf0]  ;;  %v3214_v1 = vld [vmem:[#allocation5 + $0x158] sm:$0xf0] }
  0x88   :  { %1504 = vmatpush.bf16.msrb.mxu1 %v3133_v36  ;;  %v3180_v36 = vld [vmem:[#allocation5 + $0x108] sm:$0xf]  ;;  %v3437_v56 = vor.u32 %v4569_v41, %v3436_v39  ;;  %v3102_v41 = vld [vmem:[#allocation5 + $0x78] sm:$0xf0]  ;;  %v4609_v48 = vld [vmem:[#allocation5 + $0x454] sm:$0xf0] }
  0x89   :  { %1542 = vmatpush.bf16.msra.mxu2 %v3533_v28  ;;  %v3052_v28 = vld [vmem:[#allocation5 + $0x8] sm:$0xf]  ;;  %v3198_v14 = vld [vmem:[#allocation5 + $0x138] sm:$0xf0] }
  0x8a   :  { %1516 = vmatpush.bf16.msra.mxu3 %v3277_v32  ;;  %v3676_v32 = vld [vmem:[#allocation5 + $0x4e8] sm:$0xf]  ;;  %v3053_v44 = vor.u32 %v4473_v31, %v3052_v28  ;;  %v3629_v28 = vor.u32 %v4617_v21, %v3628_v20  ;;  %v4471_v20 = vld [vmem:[#allocation5 + $0xc] sm:$0xf]  ;;  %v3054_v21 = vld [vmem:[#allocation5 + $0x18] sm:$0xf0] }
  0x8b   :  { %1531 = vmatpush.bf16.msrb.mxu0 %v3373_v53  ;;  %v4661_v53 = vld [vmem:[#allocation5 + $0x5f4] sm:$0xf0]  ;;  %v3756_v31 = vld [vmem:[#allocation5 + $0x588] sm:$0xf]  ;;  %v3550_v26 = vld [vmem:[#allocation5 + $0x3f8] sm:$0xf0] }
  0x8c   :  { %1505 = vmatpush.bf16.msrb.mxu1 %v3117_v49  ;;  %v3677_v49 = vor.u32 %v4629_v33, %v3676_v32  ;;  %v4649_v32 = vld [vmem:[#allocation5 + $0x594] sm:$0xf0]  ;;  %v3612_v33 = vld [vmem:[#allocation5 + $0x468] sm:$0xf] }
  0x8d   :  { %1543 = vmatpush.bf16.msra.mxu2 %v3517_v42  ;;  %v3820_v42 = vld [vmem:[#allocation5 + $0x608] sm:$0xf]  ;;  %v3757_v39 = vor.u32 %v4649_v32, %v3756_v31  ;;  %v4559_v31 = vld [vmem:[#allocation5 + $0x2cc] sm:$0xf]  ;;  %v3057_v32 = vor.u32 %v4471_v20, %v3054_v21 }
  0x8e   :  { %1517 = vmatpush.bf16.msra.mxu3 %v3261_v46  ;;  %v4505_v46 = vld [vmem:[#allocation5 + $0x114] sm:$0xf0]  ;;  %v3821_v59 = vor.u32 %v4665_v43, %v3820_v42  ;;  %v4579_v20 = vld [vmem:[#allocation5 + $0x36c] sm:$0xf] }
  0x8f   :  { %1532 = vmatpush.bf16.msrb.mxu0 %v3357_v3  ;;  %v3181_v62 = vor.u32 %v4505_v46, %v3180_v36  ;;  %v4519_v36 = vld [vmem:[#allocation5 + $0x18c] sm:$0xf]  ;;  %v4645_v46 = vld [vmem:[#allocation5 + $0x574] sm:$0xf0] }
  0x90   :  { %1506 = vmatpush.bf16.msrb.mxu1 %v3101_v0  ;;  %v3805_v0 = vor.u32 %v4661_v53, %v3804_v52  ;;  %v3249_v43 = vor.u32 %v4519_v36, %v3246_v37  ;;  %v3182_v36 = vld [vmem:[#allocation5 + $0x118] sm:$0xf0] }
  0x91   :  { %1544 = vmatpush.bf16.msra.mxu2 %v3501_v58  ;;  %3827 = vmatmul.msk.bf16.vlgmr.msrb.gmra.mxu3 %vm1316_vm0, %v5101_v45  ;;  %v4625_v58 = vld [vmem:[#allocation5 + $0x4d4] sm:$0xf0] }
  0x92   :  { %1518 = vmatpush.bf16.msra.mxu3 %v3245_v61  ;;  %v3294_v61 = vld [vmem:[#allocation5 + $0x1f8] sm:$0xf0]  ;;  %v3661_v3 = vor.u32 %v4625_v58, %v3660_v54  ;;  %v4479_v54 = vld [vmem:[#allocation5 + $0x4c] sm:$0xf]  ;;  %v3597_v58 = vor.u32 %v4609_v48, %v3596_v47 }
  0x93   :  { %1533 = vmatpush.bf16.msrb.mxu0 %v3341_v16  ;;  %v3297_v4 = vor.u32 %v4531_v60, %v3294_v61  ;;  %v3645_v16 = vor.u32 %v4621_v9, %v3644_v8  ;;  %v3724_v60 = vld [vmem:[#allocation5 + $0x548] sm:$0xf]  ;;  %v4641_v61 = vld [vmem:[#allocation5 + $0x554] sm:$0xf0]  ;;  %v4623_v47 = vld [vmem:[#allocation5 + $0x4cc] sm:$0xf] }
  0x94   :  { %1507 = vmatpush.bf16.msrb.mxu1 %v3085_v13  ;;  %v3708_v9 = vld [vmem:[#allocation5 + $0x528] sm:$0xf]  ;;  %v3662_v48 = vld [vmem:[#allocation5 + $0x4d8] sm:$0xf0] }
  0x95   :  { %1545 = vmatpush.bf16.msra.mxu2 %v3485_v6  ;;  %v4657_v6 = vld [vmem:[#allocation5 + $0x5d4] sm:$0xf0] }
  0x96   :  { %1519 = vmatpush.bf16.msra.mxu3 %v3229_v10  ;;  %v4527_v10 = vld [vmem:[#allocation5 + $0x1cc] sm:$0xf]  ;;  %v3789_v13 = vor.u32 %v4657_v6, %v3788_v5  ;;  %v3070_v5 = vld [vmem:[#allocation5 + $0x38] sm:$0xf0] }
  0x97   :  { %1534 = vmatpush.bf16.msrb.mxu0 %v3325_v29  ;;  %v3281_v17 = vor.u32 %v4527_v10, %v3278_v11  ;;  %v4637_v10 = vld [vmem:[#allocation5 + $0x534] sm:$0xf0]  ;;  %v3564_v11 = vld [vmem:[#allocation5 + $0x408] sm:$0xf] }
  0x98   :  { %1508 = vmatpush.bf16.msrb.mxu1 %v3069_v25 }
  0x99   :  { %1546 = vmatpush.bf16.msra.mxu2 %v3469_v19  ;;  %v4653_v19 = vld [vmem:[#allocation5 + $0x5b4] sm:$0xf0] }
  0x9a   :  { %1520 = vmatpush.bf16.msra.mxu3 %v3213_v22  ;;  %v4523_v22 = vld [vmem:[#allocation5 + $0x1ac] sm:$0xf]  ;;  %v3773_v25 = vor.u32 %v4653_v19, %v3772_v18  ;;  %v3709_v18 = vor.u32 %v4637_v10, %v3708_v9  ;;  %v3692_v19 = vld [vmem:[#allocation5 + $0x508] sm:$0xf]  ;;  %v3502_v10 = vld [vmem:[#allocation5 + $0x398] sm:$0xf0] }
  0x9b   :  { %1535 = vmatpush.bf16.msrb.mxu0 %v3309_v50  ;;  %v3265_v29 = vor.u32 %v4523_v22, %v3262_v23  ;;  %v3230_v50 = vld [vmem:[#allocation5 + $0x178] sm:$0xf0] }
  0x9c   :  { %1509 = vmatpush.bf16.msrb.mxu1 %v3053_v44  ;;  %v3740_v44 = vld [vmem:[#allocation5 + $0x568] sm:$0xf] }
  0x9d   :  { %1547 = vmatpush.bf16.msra.mxu2 %v3453_v34  ;;  %v4613_v34 = vld [vmem:[#allocation5 + $0x474] sm:$0xf0]  ;;  %v3741_v53 = vor.u32 %v4645_v46, %v3740_v44  ;;  %v3534_v46 = vld [vmem:[#allocation5 + $0x3d8] sm:$0xf0] }
  0x9e   :  { %1521 = vmatpush.bf16.msra.mxu3 %v3197_v40  ;;  %1536 = vmatmul.bf16.vlgmr.msrb.gmra.mxu0 %v5089_v51  ;;  %v4483_v40 = vld [vmem:[#allocation5 + $0x6c] sm:$0xf]  ;;  %v3613_v42 = vor.u32 %v4613_v34, %v3612_v33  ;;  %v3406_v33 = vld [vmem:[#allocation5 + $0x2d8] sm:$0xf0] }
  0x9f   :  { %1587 = vmatpush.bf16.msra.mxu0 %v3821_v59  ;;  %1510 = vmatmul.bf16.vlgmr.msrb.gmra.mxu1 %v5091_v55  ;;  %v3105_v52 = vor.u32 %v4483_v40, %v3102_v41  ;;  %v4503_v34 = vld [vmem:[#allocation5 + $0x10c] sm:$0xf] }
  0xa0   :  { %1554 = vmatpush.bf16.msra.mxu1 %v3677_v49  ;;  %v4515_v49 = vld [vmem:[#allocation5 + $0x16c] sm:$0xf]  ;;  %v3185_v44 = vor.u32 %v4503_v34, %v3182_v36 }
  0xa1   :  { %1548 = vmatpush.bf16.msra.mxu2 %v3437_v56  ;;  %v3086_v56 = vld [vmem:[#allocation5 + $0x58] sm:$0xf0]  ;;  %v3233_v59 = vor.u32 %v4515_v49, %v3230_v50  ;;  %v4555_v50 = vld [vmem:[#allocation5 + $0x2ac] sm:$0xf] }
  0xa2   :  { %1522 = vmatpush.bf16.msra.mxu3 %v3181_v62  ;;  %v3580_v62 = vld [vmem:[#allocation5 + $0x428] sm:$0xf]  ;;  %v3089_v2 = vor.u32 %v4479_v54, %v3086_v56  ;;  %v3790_v54 = vld [vmem:[#allocation5 + $0x5d8] sm:$0xf0]  ;;  %v4575_v34 = vld [vmem:[#allocation5 + $0x34c] sm:$0xf] }
  0xa3   :  { %1606 = vmatpush.bf16.msrb.mxu0 %v3297_v4  ;;  %v4475_v4 = vld [vmem:[#allocation5 + $0x2c] sm:$0xf] }
  0xa4   :  { %1555 = vmatpush.bf16.msra.mxu1 %v3661_v3  ;;  %1549 = vmatmul.bf16.vlgmr.msra.gmra.mxu2 %v5093_v57  ;;  %v3725_v3 = vor.u32 %v4641_v61, %v3724_v60  ;;  %v3073_v15 = vor.u32 %v4475_v4, %v3070_v5  ;;  %v3518_v61 = vld [vmem:[#allocation5 + $0x3b8] sm:$0xf0] }
  0xa5   :  { %1593 = vmatpush.bf16.msrb.mxu2 %v3169_v63  ;;  %1523 = vmatmul.bf16.vlgmr.msra.gmra.mxu3 %v5097_v7  ;;  %v4605_v63 = vld [vmem:[#allocation5 + $0x434] sm:$0xf0]  ;;  %v3774_v4 = vld [vmem:[#allocation5 + $0x5b8] sm:$0xf0] }
  0xa6   :  { %1567 = vmatpush.bf16.msrb.mxu3 %v3805_v0  ;;  %v4511_v0 = vld [vmem:[#allocation5 + $0x14c] sm:$0xf]  ;;  %v3581_v6 = vor.u32 %v4605_v63, %v3580_v62  ;;  %v3646_v63 = vld [vmem:[#allocation5 + $0x4b8] sm:$0xf0] }
  0xa7   :  { %1607 = vmatpush.bf16.msrb.mxu0 %v3281_v17  ;;  %v3217_v8 = vor.u32 %v4511_v0, %v3214_v1  ;;  %v3422_v17 = vld [vmem:[#allocation5 + $0x2f8] sm:$0xf0]  ;;  %v4619_v62 = vld [vmem:[#allocation5 + $0x4ac] sm:$0xf] }
  0xa8   :  { %1556 = vmatpush.bf16.msra.mxu1 %v3645_v16  ;;  %v4563_v16 = vld [vmem:[#allocation5 + $0x2ec] sm:$0xf] }
  0xa9   :  { %1594 = vmatpush.bf16.msrb.mxu2 %v3153_v12  ;;  %v4601_v12 = vld [vmem:[#allocation5 + $0x414] sm:$0xf0]  ;;  %v3425_v27 = vor.u32 %v4563_v16, %v3422_v17  ;;  %v4551_v1 = vld [vmem:[#allocation5 + $0x28c] sm:$0xf]  ;;  %v3758_v17 = vld [vmem:[#allocation5 + $0x598] sm:$0xf0] }
  0xaa   :  { %1568 = vmatpush.bf16.msrb.mxu3 %v3789_v13  ;;  %v4507_v13 = vld [vmem:[#allocation5 + $0x12c] sm:$0xf]  ;;  %v3565_v22 = vor.u32 %v4601_v12, %v3564_v11  ;;  %v3630_v12 = vld [vmem:[#allocation5 + $0x498] sm:$0xf0] }
  0xab   :  { %1608 = vmatpush.bf16.msrb.mxu0 %v3265_v29  ;;  %v3201_v23 = vor.u32 %v4507_v13, %v3198_v14  ;;  %v3678_v29 = vld [vmem:[#allocation5 + $0x4f8] sm:$0xf0]  ;;  %v4615_v11 = vld [vmem:[#allocation5 + $0x48c] sm:$0xf] }
  0xac   :  { %1557 = vmatpush.bf16.msra.mxu1 %v3629_v28  ;;  %v4627_v28 = vld [vmem:[#allocation5 + $0x4ec] sm:$0xf] }
  0xad   :  { %1595 = vmatpush.bf16.msrb.mxu2 %v3137_v24  ;;  %v4633_v24 = vld [vmem:[#allocation5 + $0x514] sm:$0xf0]  ;;  %v3681_v41 = vor.u32 %v4627_v28, %v3678_v29  ;;  %v4547_v14 = vld [vmem:[#allocation5 + $0x26c] sm:$0xf]  ;;  %v3742_v29 = vld [vmem:[#allocation5 + $0x578] sm:$0xf0] }
  0xae   :  { %1569 = vmatpush.bf16.msrb.mxu3 %v3773_v25  ;;  %3828 = vmatmul.msk.bf16.vlgmr.msra.gmra.mxu0 %vm1316_vm0, %v5101_v45  ;;  %v4595_v25 = vld [vmem:[#allocation5 + $0x3ec] sm:$0xf]  ;;  %v3693_v37 = vor.u32 %v4633_v24, %v3692_v19  ;;  %v3633_v19 = vor.u32 %v4615_v11, %v3630_v12  ;;  %v3614_v24 = vld [vmem:[#allocation5 + $0x478] sm:$0xf0] }
  0xaf   :  { %1609 = vmatpush.bf16.msrb.mxu0 %v3249_v43  ;;  %v3553_v40 = vor.u32 %v4595_v25, %v3550_v26  ;;  %v3409_v43 = vor.u32 %v4559_v31, %v3406_v33  ;;  %v4543_v26 = vld [vmem:[#allocation5 + $0x24c] sm:$0xf]  ;;  %v3566_v11 = vld [vmem:[#allocation5 + $0x418] sm:$0xf0] }
  0xb0   :  { %1558 = vmatpush.bf16.msra.mxu1 %v3613_v42  ;;  %v4591_v42 = vld [vmem:[#allocation5 + $0x3cc] sm:$0xf] }
  0xb1   :  { %1596 = vmatpush.bf16.msrb.mxu2 %v3121_v38  ;;  %v4659_v38 = vld [vmem:[#allocation5 + $0x5ec] sm:$0xf]  ;;  %v3537_v56 = vor.u32 %v4591_v42, %v3534_v46 }
  0xb2   :  { %1570 = vmatpush.bf16.msrb.mxu3 %v3757_v39  ;;  %v3806_v39 = vld [vmem:[#allocation5 + $0x5f8] sm:$0xf0]  ;;  %v4643_v28 = vld [vmem:[#allocation5 + $0x56c] sm:$0xf] }
  0xb3   :  { %1610 = vmatpush.bf16.msrb.mxu0 %v3233_v59  ;;  %v3809_v49 = vor.u32 %v4659_v38, %v3806_v39  ;;  %v4587_v59 = vld [vmem:[#allocation5 + $0x3ac] sm:$0xf]  ;;  %v3470_v38 = vld [vmem:[#allocation5 + $0x358] sm:$0xf0] }
  0xb4   :  { %1559 = vmatpush.bf16.msra.mxu1 %v3597_v58  ;;  %v3665_v58 = vor.u32 %v4623_v47, %v3662_v48  ;;  %v3521_v5 = vor.u32 %v4587_v59, %v3518_v61  ;;  %v4607_v39 = vld [vmem:[#allocation5 + $0x44c] sm:$0xf]  ;;  %v3726_v47 = vld [vmem:[#allocation5 + $0x558] sm:$0xf0]  ;;  %v3473_v48 = vor.u32 %v4575_v34, %v3470_v38  ;;  %v3912_v38 = vld [vmem:[#allocation8 + $0xa0] sm:$0xf] }
  0xb5   :  { %1597 = vmatpush.bf16.msrb.mxu2 %v3105_v52  ;;  %v3390_v52 = vld [vmem:[#allocation5 + $0x2b8] sm:$0xf0]  ;;  %v4539_v42 = vld [vmem:[#allocation5 + $0x22c] sm:$0xf] }
  0xb6   :  { %1571 = vmatpush.bf16.msrb.mxu3 %v3741_v53  ;;  %v4655_v53 = vld [vmem:[#allocation5 + $0x5cc] sm:$0xf]  ;;  %v3393_v60 = vor.u32 %v4555_v50, %v3390_v52 }
  0xb7   :  { %1611 = vmatpush.bf16.msrb.mxu0 %v3217_v8  ;;  %v3793_v0 = vor.u32 %v4655_v53, %v3790_v54  ;;  %v4583_v8 = vld [vmem:[#allocation5 + $0x38c] sm:$0xf]  ;;  %v3454_v53 = vld [vmem:[#allocation5 + $0x338] sm:$0xf0] }
  0xb8   :  { %1560 = vmatpush.bf16.msra.mxu1 %v3581_v6  ;;  %v3649_v6 = vor.u32 %v4619_v62, %v3646_v63  ;;  %v4639_v46 = vld [vmem:[#allocation5 + $0x54c] sm:$0xf]  ;;  %v3710_v63 = vld [vmem:[#allocation5 + $0x538] sm:$0xf0] }
  0xb9   :  { %1598 = vmatpush.bf16.msrb.mxu2 %v3089_v2  ;;  %v3374_v2 = vld [vmem:[#allocation5 + $0x298] sm:$0xf0]  ;;  %v4571_v50 = vld [vmem:[#allocation5 + $0x32c] sm:$0xf] }
  0xba   :  { %1572 = vmatpush.bf16.msrb.mxu3 %v3725_v3  ;;  %v4651_v3 = vld [vmem:[#allocation5 + $0x5ac] sm:$0xf]  ;;  %v3377_v9 = vor.u32 %v4551_v1, %v3374_v2  ;;  %v3822_v1 = vld [vmem:[#allocation5 + $0x618] sm:$0xf0]  ;;  %v5137_v2 = vld [vmem:[#allocation7] sm:$0xf] }
  0xbb   :  { %1612 = vmatpush.bf16.msrb.mxu0 %v3201_v23  ;;  %v3777_v13 = vor.u32 %v4651_v3, %v3774_v4  ;;  %v5129_v16 = vpop.f32.mrf.mxu0  ;;  %v4611_v23 = vld [vmem:[#allocation5 + $0x46c] sm:$0xf]  ;;  %v3457_v4 = vor.u32 %v4571_v50, %v3454_v53 }
  0xbc   :  { %1561 = vmatpush.bf16.msra.mxu1 %v3565_v22  ;;  %v3486_v22 = vld [vmem:[#allocation5 + $0x378] sm:$0xf0]  ;;  %v3617_v33 = vor.u32 %v4611_v23, %v3614_v24  ;;  %v4603_v54 = vld [vmem:[#allocation5 + $0x42c] sm:$0xf] }
  0xbd   :  { %1599 = vmatpush.bf16.msrb.mxu2 %v3073_v15  ;;  %v3358_v15 = vld [vmem:[#allocation5 + $0x278] sm:$0xf0]  ;;  %v4535_v59 = vld [vmem:[#allocation5 + $0x20c] sm:$0xf] }
  0xbe   :  { %1573 = vmatpush.bf16.msrb.mxu3 %v3709_v18  ;;  %v3505_v18 = vor.u32 %v4583_v8, %v3502_v10  ;;  %v3361_v21 = vor.u32 %v4547_v14, %v3358_v15  ;;  %v4635_v61 = vld [vmem:[#allocation5 + $0x52c] sm:$0xf]  ;;  %v3944_v14 = vld [vmem:[#allocation8 + $0xe0] sm:$0xf]  ;;  %v4696_v15 = vld [vmem:[#allocation8 + $0xec] sm:$0xf0] }
  0xbf   :  { %1562 = vmatmul.bf16.vlgmr.msra.gmra.mxu1 %v5105_v30  ;;  %1613 = vmatpush.bf16.msrb.mxu0 %v3185_v44  ;;  %v4599_v10 = vld [vmem:[#allocation5 + $0x40c] sm:$0xf]  ;;  %v3945_v24 = vor.u32 %v4696_v15, %v3944_v14  ;;  %v3832_v14 = vld [vmem:[#allocation8] sm:$0xf]  ;;  %v4668_v15 = vld [vmem:[#allocation8 + $0xc] sm:$0xf0] }
  0xc0   :  { %1619 = vmatpush.bf16.msrb.mxu1 %v3425_v27  ;;  %v3342_v27 = vld [vmem:[#allocation5 + $0x258] sm:$0xf0]  ;;  %v3569_v23 = vor.u32 %v4599_v10, %v3566_v11  ;;  %v3976_v11 = vld [vmem:[#allocation8 + $0x120] sm:$0xf] }
  0xc1   :  { %1600 = vmatpush.bf16.msrb.mxu2 %v3057_v32  ;;  %v3489_v32 = vor.u32 %v4579_v20, %v3486_v22  ;;  %v3345_v36 = vor.u32 %v4543_v26, %v3342_v27  ;;  %v4728_v20 = vld [vmem:[#allocation8 + $0x1ec] sm:$0xf0]  ;;  %v3928_v26 = vld [vmem:[#allocation8 + $0xc0] sm:$0xf] }
  0xc2   :  { %1574 = vmatpush.bf16.msrb.mxu3 %v3693_v37  ;;  %1614 = vmatmul.bf16.vlgmr.msrb.gmra.mxu0 %v5097_v7  ;;  %v5131_v25 = vpop.f32.mrf.mxu1  ;;  %v4692_v27 = vld [vmem:[#allocation8 + $0xcc] sm:$0xf0] }
  0xc3   :  { %1658 = vmatpush.bf16.msra.mxu0 %v3809_v49  ;;  %v5133_v31 = vpop.f32.mrf.mxu2  ;;  %v1331_v44 = vpop.f32.mrf.mxu0 }
  0xc4   :  { %1620 = vmatpush.bf16.msrb.mxu1 %v3409_v43  ;;  %1601 = vmatmul.bf16.vlgmr.msrb.gmra.mxu2 %v5091_v55  ;;  %v4647_v55 = vld [vmem:[#allocation5 + $0x58c] sm:$0xf]  ;;  %v3326_v43 = vld [vmem:[#allocation5 + $0x238] sm:$0xf0]  ;;  %v4684_v44 = vld [vmem:[#allocation8 + $0x8c] sm:$0xf0] }
  0xc5   :  { %1645 = vmatpush.bf16.msra.mxu2 %v3681_v41  ;;  %1575 = vmatmul.bf16.vlgmr.msrb.gmra.mxu3 %v5107_v35  ;;  %v3761_v7 = vor.u32 %v4647_v55, %v3758_v17  ;;  %v3745_v41 = vor.u32 %v4643_v28, %v3742_v29  ;;  %v3329_v52 = vor.u32 %v4539_v42, %v3326_v43  ;;  %v4631_v55 = vld [vmem:[#allocation5 + $0x50c] sm:$0xf]  ;;  %v4056_v29 = vld [vmem:[#allocation8 + $0x1c0] sm:$0xf]  ;;  %v4720_v42 = vld [vmem:[#allocation8 + $0x1ac] sm:$0xf0] }
  0xc6   :  { %1632 = vmatpush.bf16.msra.mxu3 %v3553_v40  ;;  %v5135_v37 = vpop.f32.mrf.mxu3  ;;  %v3598_v40 = vld [vmem:[#allocation5 + $0x458] sm:$0xf0] }
  0xc7   :  { %1659 = vmatpush.bf16.msra.mxu0 %v3793_v0  ;;  %v3601_v49 = vor.u32 %v4607_v39, %v3598_v40  ;;  %v4663_v0 = vld [vmem:[#allocation5 + $0x60c] sm:$0xf]  ;;  %v4688_v39 = vld [vmem:[#allocation8 + $0xac] sm:$0xf0] }
  0xc8   :  { %1621 = vmatpush.bf16.msrb.mxu1 %v3393_v60  ;;  %v3310_v60 = vld [vmem:[#allocation5 + $0x218] sm:$0xf0]  ;;  %v3825_v17 = vor.u32 %v4663_v0, %v3822_v1  ;;  %v3992_v0 = vld [vmem:[#allocation8 + $0x140] sm:$0xf]  ;;  %v4708_v1 = vld [vmem:[#allocation8 + $0x14c] sm:$0xf0] }
  0xc9   :  { %1646 = vmatpush.bf16.msra.mxu2 %v3665_v58  ;;  %v3729_v58 = vor.u32 %v4639_v46, %v3726_v47  ;;  %v3313_v8 = vor.u32 %v4535_v59, %v3310_v60  ;;  %v3993_v10 = vor.u32 %v4708_v1, %v3992_v0  ;;  %v4744_v0 = vld [vmem:[#allocation8 + $0x26c] sm:$0xf0]  ;;  %v329_v1 = vperm.slane %v5137_v2, 1 }
  0xca   :  { %1633 = vmatpush.bf16.msra.mxu3 %v3537_v56  ;;  %v3582_v56 = vld [vmem:[#allocation5 + $0x438] sm:$0xf0]  ;;  %v1344_v62 = vpop.f32.mrf.mxu1 }
  0xcb   :  { %1660 = vmatpush.bf16.msra.mxu0 %v3777_v13  ;;  %v1357_v3 = vpop.f32.mrf.mxu2  ;;  %v3713_v13 = vor.u32 %v4635_v61, %v3710_v63  ;;  %v3864_v61 = vld [vmem:[#allocation8 + $0x40] sm:$0xf]  ;;  %v4676_v62 = vld [vmem:[#allocation8 + $0x4c] sm:$0xf0] }
  0xcc   :  { %1622 = vmatpush.bf16.msrb.mxu1 %v3377_v9  ;;  %v3438_v9 = vld [vmem:[#allocation5 + $0x318] sm:$0xf0] }
  0xcd   :  { %1647 = vmatpush.bf16.msra.mxu2 %v3649_v6  ;;  %v4567_v6 = vld [vmem:[#allocation5 + $0x30c] sm:$0xf] }
  0xce   :  { %1634 = vmatpush.bf16.msra.mxu3 %v3521_v5  ;;  %v3585_v5 = vor.u32 %v4603_v54, %v3582_v56  ;;  %v1370_v12 = vpop.f32.mrf.mxu3  ;;  %v3441_v22 = vor.u32 %v4567_v6, %v3438_v9  ;;  %v4680_v54 = vld [vmem:[#allocation8 + $0x6c] sm:$0xf0]  ;;  %v4008_v56 = vld [vmem:[#allocation8 + $0x160] sm:$0xf] }
  0xcf   :  { %1661 = vmatpush.bf16.msra.mxu0 %v3761_v7  ;;  %v4672_v9 = vld [vmem:[#allocation8 + $0x2c] sm:$0xf0] }
  0xd0   :  { %1623 = vmatpush.bf16.msrb.mxu1 %v3361_v21  ;;  %v328_v21 = vperm.slane %v5137_v2, 0  ;;  %v4704_v12 = vld [vmem:[#allocation8 + $0x12c] sm:$0xf0] }
  0xd1   :  { %1648 = vmatpush.bf16.msra.mxu2 %v3633_v19  ;;  %v4072_v19 = vld [vmem:[#allocation8 + $0x1e0] sm:$0xf] }
  0xd2   :  { %1635 = vmatpush.bf16.msra.mxu3 %v3505_v18  ;;  %v3694_v18 = vld [vmem:[#allocation5 + $0x518] sm:$0xf0]  ;;  %v4073_v28 = vor.u32 %v4728_v20, %v4072_v19  ;;  %v4760_v19 = vld [vmem:[#allocation8 + $0x2ec] sm:$0xf0] }
  0xd3   :  { %1662 = vmatpush.bf16.msra.mxu0 %v3745_v41  ;;  %v3697_v7 = vor.u32 %v4631_v55, %v3694_v18  ;;  %v5142_v34 = vpop.f32.mrf.mxu2  ;;  %v4040_v41 = vld [vmem:[#allocation8 + $0x1a0] sm:$0xf] }
  0xd4   :  { %1624 = vmatpush.bf16.msrb.mxu1 %v3345_v36  ;;  %v3929_v36 = vor.u32 %v4692_v27, %v3928_v26  ;;  %v4041_v46 = vor.u32 %v4720_v42, %v4040_v41  ;;  %v4200_v18 = vld [vmem:[#allocation8 + $0x2e0] sm:$0xf]  ;;  %v4074_v26 = vld [vmem:[#allocation8 + $0x1f0] sm:$0xf0]  ;;  %v3833_v27 = vor.u32 %v4668_v15, %v3832_v14  ;;  %v4722_v42 = vld [vmem:[#allocation8 + $0x1c4] sm:$0xf] }
  0xd5   :  { %1649 = vmatpush.bf16.msra.mxu2 %v3617_v33  ;;  %v1330_v33 = vadd.f32 %v5129_v16, %v328_v21  ;;  %v3896_v16 = vld [vmem:[#allocation8 + $0x80] sm:$0xf]  ;;  %v3946_v21 = vld [vmem:[#allocation8 + $0xf0] sm:$0xf0]  ;;  %v4674_v15 = vld [vmem:[#allocation8 + $0x44] sm:$0xf] }
  0xd6   :  { %1636 = vmatpush.bf16.msra.mxu3 %v3489_v32  ;;  %v4724_v32 = vld [vmem:[#allocation8 + $0x1cc] sm:$0xf0]  ;;  %v3897_v53 = vor.u32 %v4684_v44, %v3896_v16  ;;  %v4168_v44 = vld [vmem:[#allocation8 + $0x2a0] sm:$0xf] }
  0xd7   :  { %1663 = vmatpush.bf16.msra.mxu0 %v3729_v58  ;;  %v4057_v40 = vor.u32 %v4724_v32, %v4056_v29  ;;  %v1343_v43 = vadd.f32 %v5131_v25, %v1330_v33  ;;  %v3880_v25 = vld [vmem:[#allocation8 + $0x60] sm:$0xf] }
  0xd8   :  { %1625 = vmatpush.bf16.msrb.mxu1 %v3329_v52  ;;  %v3881_v59 = vor.u32 %v4680_v54, %v3880_v25  ;;  %v4152_v25 = vld [vmem:[#allocation8 + $0x280] sm:$0xf]  ;;  %v4748_v54 = vld [vmem:[#allocation8 + $0x28c] sm:$0xf0] }
  0xd9   :  { %1650 = vmatpush.bf16.msra.mxu2 %v3601_v49  ;;  %v4716_v49 = vld [vmem:[#allocation8 + $0x18c] sm:$0xf0]  ;;  %v1356_v50 = vadd.f32 %v5133_v31, %v1343_v43  ;;  %v4058_v43 = vld [vmem:[#allocation8 + $0x1d0] sm:$0xf0] }
  0xda   :  { %1637 = vmatpush.bf16.msra.mxu3 %v3473_v48  ;;  %v4024_v48 = vld [vmem:[#allocation8 + $0x180] sm:$0xf] }
  0xdb   :  { %1664 = vmatpush.bf16.msra.mxu0 %v3713_v13  ;;  %v1381_v47 = vpop.f32.mrf.mxu0  ;;  %v1409_v52 = vpop.f32.mrf.mxu2  ;;  %v1369_v58 = vadd.f32 %v5135_v37, %v1356_v50 }
  0xdc   :  { %1626 = vmatpush.bf16.msrb.mxu1 %v3313_v8  ;;  %v3848_v8 = vld [vmem:[#allocation8 + $0x20] sm:$0xf]  ;;  %v4042_v52 = vld [vmem:[#allocation8 + $0x1b0] sm:$0xf0] }
  0xdd   :  { %1651 = vmatpush.bf16.msra.mxu2 %v3585_v5  ;;  %v1382_v60 = vadd.f32 %v1381_v47, %v1369_v58  ;;  %v3865_v5 = vor.u32 %v4676_v62, %v3864_v61  ;;  %v3849_v13 = vor.u32 %v4672_v9, %v3848_v8  ;;  %v4686_v47 = vld [vmem:[#allocation8 + $0xa4] sm:$0xf]  ;;  %v4153_v58 = vor.u32 %v4748_v54, %v4152_v25 }
  0xde   :  { %1638 = vmatpush.bf16.msra.mxu3 %v3457_v4  ;;  %v4710_v9 = vld [vmem:[#allocation8 + $0x164] sm:$0xf] }
  0xdf   :  { %1627 = vmatmul.bf16.vlgmr.msrb.gmra.mxu1 %v5089_v51  ;;  %1665 = vmatpush.bf16.msra.mxu0 %v3697_v7  ;;  %v3913_v51 = vor.u32 %v4688_v39, %v3912_v38  ;;  %v4726_v7 = vld [vmem:[#allocation8 + $0x1e4] sm:$0xf]  ;;  %v3930_v39 = vld [vmem:[#allocation8 + $0xd0] sm:$0xf0] }
  0xe0   :  { %1678 = vmatpush.bf16.msra.mxu1 %v3825_v17  ;;  %v3977_v17 = vor.u32 %v4704_v12, %v3976_v11  ;;  %v4690_v38 = vld [vmem:[#allocation8 + $0xc4] sm:$0xf]  ;;  %v4120_v12 = vld [vmem:[#allocation8 + $0x240] sm:$0xf] }
  0xe1   :  { %1652 = vmatpush.bf16.msra.mxu2 %v3569_v23  ;;  %v4700_v23 = vld [vmem:[#allocation8 + $0x10c] sm:$0xf0]  ;;  %v3933_v16 = vor.u32 %v4690_v38, %v3930_v39  ;;  %v4666_v38 = vld [vmem:[#allocation8 + $0x4] sm:$0xf] }
  0xe2   :  { %1639 = vmatpush.bf16.msra.mxu3 %v3441_v22  ;;  %1666 = vmatmul.bf16.vlgmr.msra.gmra.mxu0 %v5107_v35  ;;  %v4712_v35 = vld [vmem:[#allocation8 + $0x16c] sm:$0xf0]  ;;  %v3960_v22 = vld [vmem:[#allocation8 + $0x100] sm:$0xf] }
  0xe3   :  { %v4009_v63 = vor.u32 %v4712_v35, %v4008_v56  ;;  %v1383_v3 = vpop.f32.mrf.mxu0  ;;  %v3961_v33 = vor.u32 %v4700_v23, %v3960_v22  ;;  %v3898_v56 = vld [vmem:[#allocation8 + $0x90] sm:$0xf0] }
  0xe4   :  { %2483 = vmatpush.bf16.msrb.mxu1 %v4073_v28  ;;  %1653 = vmatmul.bf16.vlgmr.msra.gmra.mxu2 %v5105_v30  ;;  %v4025_v30 = vor.u32 %v4716_v49, %v4024_v48  ;;  %v5150_v31 = vpop.f32.mrf.mxu3  ;;  %v3914_v48 = vld [vmem:[#allocation8 + $0xb0] sm:$0xf0]  ;;  %v4061_v49 = vor.u32 %v4722_v42, %v4058_v43  ;;  %v4732_v42 = vld [vmem:[#allocation8 + $0x20c] sm:$0xf0]  ;;  %v3952_v43 = vld [vmem:[#allocation8 + $0xe8] sm:$0xf] }
  0xe5   :  { %1640 = vmatmul.bf16.vlgmr.msra.gmra.mxu3 %v5093_v57  ;;  %v1394_v57 = vpop.f32.mrf.mxu1  ;;  %v1421_v14 = vadd.f32 %v5150_v31, %v329_v1 }
  0xe6   :  { %2470 = vmatpush.bf16.msrb.mxu3 %v3945_v24  ;;  %v1395_v37 = vadd.f32 %v1394_v57, %v1382_v60  ;;  %v4201_v24 = vor.u32 %v4760_v19, %v4200_v18  ;;  %v4718_v57 = vld [vmem:[#allocation8 + $0x1a4] sm:$0xf]  ;;  %v4026_v60 = vld [vmem:[#allocation8 + $0x190] sm:$0xf0] }
  0xe7   :  { %v5154_v6 = vpop.f32.mrf.mxu2  ;;  %v4045_v35 = vor.u32 %v4718_v57, %v4042_v52  ;;  %v4706_v19 = vld [vmem:[#allocation8 + $0x144] sm:$0xf] }
  0xe8   :  { %2484 = vmatpush.bf16.msrb.mxu1 %v4057_v40  ;;  %v1408_v55 = vadd.f32 %v5142_v34, %v1395_v37  ;;  %2496 = vmatpush.bf16.msrb.mxu2 %v4201_v24  ;;  %v4184_v34 = vld [vmem:[#allocation8 + $0x2c0] sm:$0xf]  ;;  %v4077_v40 = vor.u32 %v4726_v7, %v4074_v26  ;;  %v4736_v7 = vld [vmem:[#allocation8 + $0x22c] sm:$0xf0]  ;;  %v1434_v26 = vadd.f32 %v5154_v6, %v1421_v14  ;;  %v4080_v14 = vld [vmem:[#allocation8 + $0x1e8] sm:$0xf] }
  0xe9   :  { %v4104_v24 = vld [vmem:[#allocation8 + $0x220] sm:$0xf] }
  0xea   :  { %2471 = vmatpush.bf16.msrb.mxu3 %v3929_v36  ;;  %v1684_v29 = vmax.f32 %v1408_v55, 0.0  ;;  %v4756_v36 = vld [vmem:[#allocation8 + $0x2cc] sm:$0xf0]  ;;  %v3866_v55 = vld [vmem:[#allocation8 + $0x50] sm:$0xf0] }
  0xeb   :  { %v4185_v41 = vor.u32 %v4756_v36, %v4184_v34  ;;  %v3869_v23 = vor.u32 %v4674_v15, %v3866_v55  ;;  %v3978_v34 = vld [vmem:[#allocation8 + $0x130] sm:$0xf0]  ;;  %v4729_v15 = vld [vmem:[#allocation8 + $0x1f4] sm:$0xf0] }
  0xec   :  { %2485 = vmatpush.bf16.msrb.mxu1 %v4041_v46  ;;  %v1422_v20 = vpop.f32.mrf.mxu3  ;;  %v4752_v46 = vld [vmem:[#allocation8 + $0x2ac] sm:$0xf0] }
  0xed   :  { %v1396_v4 = vpop.f32.mrf.mxu1  ;;  %2497 = vmatpush.bf16.msrb.mxu2 %v4185_v41  ;;  %v4169_v50 = vor.u32 %v4752_v46, %v4168_v44  ;;  %v3994_v20 = vld [vmem:[#allocation8 + $0x150] sm:$0xf0]  ;;  %v4088_v41 = vld [vmem:[#allocation8 + $0x200] sm:$0xf]  ;;  %v4758_v44 = vld [vmem:[#allocation8 + $0x2e4] sm:$0xf] }
  0xee   :  { %2472 = vmatpush.bf16.msrb.mxu3 %v3913_v51  ;;  %v5157_v51 = vpack.c.bf16 %v1684_v29, %v1684_v29  ;;  %v4678_v4 = vld [vmem:[#allocation8 + $0x64] sm:$0xf]  ;;  %v3997_v31 = vor.u32 %v4706_v19, %v3994_v20  ;;  %v4089_v6 = vor.u32 %v4732_v42, %v4088_v41  ;;  %v4202_v46 = vld [vmem:[#allocation8 + $0x2f0] sm:$0xf0]  ;;  %v4685_v19 = vld [vmem:[#allocation8 + $0x94] sm:$0xf0] }
  0xef   :  { %3829 = vmatmul.msk.bf16.vlgmr.msra.gmra.mxu1 %vm1316_vm0, %v5101_v45  ;;  %v4694_v45 = vld [vmem:[#allocation8 + $0xe4] sm:$0xf]  ;;  %v1435_v28 = vpop.f32.mrf.mxu2  ;;  %v4205_v57 = vor.u32 %v4758_v44, %v4202_v46  ;;  %v4280_v42 = vld [vmem:[#allocation8 + $0x380] sm:$0xf] }
  0xf0   :  { %2486 = vmatpush.bf16.msrb.mxu1 %v4025_v30  ;;  %v3949_v32 = vor.u32 %v4694_v45, %v3946_v21  ;;  %v4682_v30 = vld [vmem:[#allocation8 + $0x84] sm:$0xf]  ;;  %v3850_v28 = vld [vmem:[#allocation8 + $0x30] sm:$0xf0] }
  0xf1   :  { %2498 = vmatpush.bf16.msrb.mxu2 %v4169_v50  ;;  %v3901_v62 = vor.u32 %v4682_v30, %v3898_v56  ;;  %v3962_v50 = vld [vmem:[#allocation8 + $0x110] sm:$0xf0]  ;;  %v3936_v56 = vld [vmem:[#allocation8 + $0xc8] sm:$0xf]  ;;  %v4746_v20 = vld [vmem:[#allocation8 + $0x284] sm:$0xf] }
  0xf2   :  { %2473 = vmatpush.bf16.msrb.mxu3 %v3897_v53  ;;  %v3917_v53 = vor.u32 %v4686_v47, %v3914_v48  ;;  %v4697_v48 = vld [vmem:[#allocation8 + $0xf4] sm:$0xf0] }
  0xf3   :  { %v3953_v30 = vor.u32 %v4697_v48, %v3952_v43  ;;  %v4780_v43 = vld [vmem:[#allocation8 + $0x38c] sm:$0xf0]  ;;  %v3872_v48 = vld [vmem:[#allocation8 + $0x48] sm:$0xf] }
  0xf4   :  { %2487 = vmatpush.bf16.msrb.mxu1 %v4009_v63  ;;  %v4136_v63 = vld [vmem:[#allocation8 + $0x260] sm:$0xf]  ;;  %v4281_v44 = vor.u32 %v4780_v43, %v4280_v42  ;;  %v4790_v42 = vld [vmem:[#allocation8 + $0x3e4] sm:$0xf]  ;;  %v4330_v43 = vld [vmem:[#allocation8 + $0x3f0] sm:$0xf0] }
  0xf5   :  { %2499 = vmatpush.bf16.msrb.mxu2 %v4153_v58  ;;  %v4137_v8 = vor.u32 %v4744_v0, %v4136_v63  ;;  %v4754_v58 = vld [vmem:[#allocation8 + $0x2c4] sm:$0xf]  ;;  %v4792_v63 = vld [vmem:[#allocation8 + $0x3ec] sm:$0xf0] }
  0xf6   :  { %2474 = vmatpush.bf16.msrb.mxu3 %v3881_v59  ;;  %v4714_v59 = vld [vmem:[#allocation8 + $0x184] sm:$0xf] }
  0xf7   :  { %v4029_v37 = vor.u32 %v4714_v59, %v4026_v60  ;;  %v4186_v59 = vld [vmem:[#allocation8 + $0x2d0] sm:$0xf0]  ;;  %v4693_v60 = vld [vmem:[#allocation8 + $0xd4] sm:$0xf0] }
  0xf8   :  { %2488 = vmatpush.bf16.msrb.mxu1 %v3993_v10  ;;  %v4010_v10 = vld [vmem:[#allocation8 + $0x170] sm:$0xf0] }
  0xf9   :  { %2500 = vmatpush.bf16.msrb.mxu2 %v4137_v8  ;;  %v4013_v45 = vor.u32 %v4710_v9, %v4010_v10  ;;  %v4689_v9 = vld [vmem:[#allocation8 + $0xb4] sm:$0xf0] }
  0xfa   :  { %2475 = vmatpush.bf16.msrb.mxu3 %v3865_v5  ;;  %v3882_v5 = vld [vmem:[#allocation8 + $0x70] sm:$0xf0] }
  0xfb   :  { %v1446_v61 = vpop.f32.mrf.mxu0  ;;  %v3885_v11 = vor.u32 %v4678_v4, %v3882_v5  ;;  %v3920_v4 = vld [vmem:[#allocation8 + $0xa8] sm:$0xf]  ;;  %v4750_v5 = vld [vmem:[#allocation8 + $0x2a4] sm:$0xf] }
  0xfc   :  { %2489 = vmatpush.bf16.msrb.mxu1 %v3977_v17  ;;  %v1459_v3 = vpop.f32.mrf.mxu1  ;;  %v1447_v36 = vadd.f32 %v1446_v61, %v1434_v26  ;;  %v4189_v61 = vor.u32 %v4754_v58, %v4186_v59  ;;  %v4064_v26 = vld [vmem:[#allocation8 + $0x1c8] sm:$0xf] }
  0xfd   :  { %v3856_v59 = vld [vmem:[#allocation8 + $0x28] sm:$0xf] }
  0xfe   :  { %2476 = vmatpush.bf16.msrb.mxu3 %v3849_v13  ;;  %v4740_v13 = vld [vmem:[#allocation8 + $0x24c] sm:$0xf0]  ;;  %v1460_v52 = vadd.f32 %v1459_v3, %v1447_v36  ;;  %v3937_v3 = vor.u32 %v4693_v60, %v3936_v56  ;;  %v4717_v56 = vld [vmem:[#allocation8 + $0x194] sm:$0xf0]  ;;  %v4734_v60 = vld [vmem:[#allocation8 + $0x224] sm:$0xf] }
  0xff   :  { %v4121_v17 = vor.u32 %v4740_v13, %v4120_v12  ;;  %v4788_v12 = vld [vmem:[#allocation8 + $0x3cc] sm:$0xf0] }
 0x100   :  { %2490 = vmatpush.bf16.msrb.mxu1 %v3961_v33  ;;  %v4702_v33 = vld [vmem:[#allocation8 + $0x124] sm:$0xf] }
 0x101   :  { %2501 = vmatpush.bf16.msrb.mxu2 %v4121_v17 }
 0x102   :  { %2477 = vmatpush.bf16.msrb.mxu3 %v3833_v27  ;;  %v4670_v27 = vld [vmem:[#allocation8 + $0x24] sm:$0xf] }
 0x103   :  { %v1448_v21 = vpop.f32.mrf.mxu0  ;;  %v3853_v39 = vor.u32 %v4670_v27, %v3850_v28  ;;  %v4725_v27 = vld [vmem:[#allocation8 + $0x1d4] sm:$0xf0] }
 0x104   :  { %2535 = vmatpush.bf16.msra.mxu1 %v4077_v40  ;;  %v1472_v18 = vpop.f32.mrf.mxu3  ;;  %v1461_v29 = vpop.f32.mrf.mxu1  ;;  %v3834_v40 = vld [vmem:[#allocation8 + $0x10] sm:$0xf0]  ;;  %v4081_v21 = vor.u32 %v4729_v15, %v4080_v14  ;;  %v4669_v14 = vld [vmem:[#allocation8 + $0x14] sm:$0xf0]  ;;  %v4730_v15 = vld [vmem:[#allocation8 + $0x204] sm:$0xf] }
 0x105   :  { %2478 = vmatmul.bf16.vlgmr.msrb.gmra.mxu3 %v5157_v51  ;;  %v1473_v54 = vadd.f32 %v1472_v18, %v1460_v52  ;;  %v3921_v18 = vor.u32 %v4689_v9, %v3920_v4  ;;  %v4677_v52 = vld [vmem:[#allocation8 + $0x54] sm:$0xf0]  ;;  %v4248_v4 = vld [vmem:[#allocation8 + $0x340] sm:$0xf] }
 0x106   :  { %2522 = vmatpush.bf16.msra.mxu3 %v3949_v32  ;;  %v4105_v32 = vor.u32 %v4736_v7, %v4104_v24  ;;  %v4784_v24 = vld [vmem:[#allocation8 + $0x3ac] sm:$0xf0]  ;;  %v3873_v58 = vor.u32 %v4677_v52, %v3872_v48  ;;  %v3922_v52 = vld [vmem:[#allocation8 + $0xb8] sm:$0xf0] }
 0x107   :  { %v1485_v22 = vpop.f32.mrf.mxu2 }
 0x108   :  { %2536 = vmatpush.bf16.msra.mxu1 %v4061_v49  ;;  %2502 = vmatpush.bf16.msrb.mxu2 %v4105_v32  ;;  %v4698_v49 = vld [vmem:[#allocation8 + $0x104] sm:$0xf]  ;;  %v1486_v1 = vadd.f32 %v1485_v22, %v1473_v54  ;;  %v4154_v22 = vld [vmem:[#allocation8 + $0x290] sm:$0xf0]  ;;  %v3888_v32 = vld [vmem:[#allocation8 + $0x68] sm:$0xf] }
 0x109   :  { %v4157_v28 = vor.u32 %v4746_v20, %v4154_v22  ;;  %v4776_v54 = vld [vmem:[#allocation8 + $0x36c] sm:$0xf0]  ;;  %v4695_v22 = vld [vmem:[#allocation8 + $0xec] sm:$0xf] }
 0x10a   :  { %2523 = vmatpush.bf16.msra.mxu3 %v3933_v16  ;;  %v3981_v16 = vor.u32 %v4702_v33, %v3978_v34  ;;  %v4742_v33 = vld [vmem:[#allocation8 + $0x264] sm:$0xf]  ;;  %v4138_v34 = vld [vmem:[#allocation8 + $0x270] sm:$0xf0]  ;;  %v4768_v20 = vld [vmem:[#allocation8 + $0x32c] sm:$0xf0] }
 0x10b   :  { %v4141_v41 = vor.u32 %v4742_v33, %v4138_v34 }
 0x10c   :  { %2537 = vmatpush.bf16.msra.mxu1 %v4045_v35  ;;  %v1474_v47 = vpop.f32.mrf.mxu3  ;;  %2503 = vmatpush.bf16.msrb.mxu2 %v4089_v6  ;;  %v3965_v35 = vor.u32 %v4698_v49, %v3962_v50  ;;  %v4721_v6 = vld [vmem:[#allocation8 + $0x1b4] sm:$0xf0]  ;;  %v4738_v49 = vld [vmem:[#allocation8 + $0x244] sm:$0xf]  ;;  %v4122_v50 = vld [vmem:[#allocation8 + $0x250] sm:$0xf0] }
 0x10e   :  { %2524 = vmatpush.bf16.msra.mxu3 %v3917_v53  ;;  %v3837_v53 = vor.u32 %v4666_v38, %v3834_v40  ;;  %v4681_v40 = vld [vmem:[#allocation8 + $0x74] sm:$0xf0] }
 0x10f   :  { %v1487_v25 = vpop.f32.mrf.mxu2  ;;  %v3889_v47 = vor.u32 %v4681_v40, %v3888_v32  ;;  %v4691_v32 = vld [vmem:[#allocation8 + $0xcc] sm:$0xf]  ;;  %v3938_v40 = vld [vmem:[#allocation8 + $0xd8] sm:$0xf0] }
 0x110   :  { %2538 = vmatpush.bf16.msra.mxu1 %v4029_v37  ;;  %2548 = vmatpush.bf16.msra.mxu2 %v4205_v57  ;;  %v4170_v37 = vld [vmem:[#allocation8 + $0x2b0] sm:$0xf0]  ;;  %v4264_v25 = vld [vmem:[#allocation8 + $0x360] sm:$0xf]  ;;  %v3941_v48 = vor.u32 %v4691_v32, %v3938_v40  ;;  %v3858_v40 = vld [vmem:[#allocation8 + $0x38] sm:$0xf0] }
 0x111   :  { %v4173_v10 = vor.u32 %v4750_v5, %v4170_v37  ;;  %v4772_v5 = vld [vmem:[#allocation8 + $0x34c] sm:$0xf0]  ;;  %v4016_v37 = vld [vmem:[#allocation8 + $0x168] sm:$0xf] }
 0x112   :  { %2525 = vmatpush.bf16.msra.mxu3 %v3901_v62  ;;  %v4328_v62 = vld [vmem:[#allocation8 + $0x3e0] sm:$0xf]  ;;  %v4249_v9 = vor.u32 %v4772_v5, %v4248_v4  ;;  %v4723_v5 = vld [vmem:[#allocation8 + $0x1cc] sm:$0xf] }
 0x113   :  { %v4329_v0 = vor.u32 %v4792_v63, %v4328_v62 }
 0x114   :  { %2539 = vmatpush.bf16.msra.mxu1 %v4013_v45  ;;  %2549 = vmatpush.bf16.msra.mxu2 %v4189_v61  ;;  %v1498_v8 = vpop.f32.mrf.mxu3  ;;  %v3904_v45 = vld [vmem:[#allocation8 + $0x88] sm:$0xf]  ;;  %v4106_v61 = vld [vmem:[#allocation8 + $0x230] sm:$0xf0] }
 0x115   :  { %2509 = vmatpush.bf16.msrb.mxu0 %v4329_v0  ;;  %v1499_v13 = vadd.f32 %v1498_v8, %v1486_v1  ;;  %v3905_v29 = vor.u32 %v4685_v19, %v3904_v45  ;;  %v4673_v1 = vld [vmem:[#allocation8 + $0x34] sm:$0xf0]  ;;  %v4232_v19 = vld [vmem:[#allocation8 + $0x320] sm:$0xf] }
 0x116   :  { %2526 = vmatpush.bf16.msra.mxu3 %v3885_v11  ;;  %v4312_v11 = vld [vmem:[#allocation8 + $0x3c0] sm:$0xf]  ;;  %v4713_v8 = vld [vmem:[#allocation8 + $0x174] sm:$0xf0] }
 0x117   :  { %v4313_v55 = vor.u32 %v4788_v12, %v4312_v11  ;;  %v1685_v17 = vmax.f32 %v1499_v13, 0.0  ;;  %v3840_v11 = vld [vmem:[#allocation8 + $0x8] sm:$0xf]  ;;  %v3857_v13 = vor.u32 %v4673_v1, %v3856_v59  ;;  %v4017_v45 = vor.u32 %v4713_v8, %v4016_v37  ;;  %v4782_v1 = vld [vmem:[#allocation8 + $0x3a4] sm:$0xf] }
 0x118   :  { %2540 = vmatpush.bf16.msra.mxu1 %v3997_v31  ;;  %2550 = vmatpush.bf16.msra.mxu2 %v4173_v10 }
 0x119   :  { %2510 = vmatpush.bf16.msrb.mxu0 %v4313_v55  ;;  %v5164_v7 = vpack.c.bf16 %v1685_v17, %v1685_v17  ;;  %v4090_v55 = vld [vmem:[#allocation8 + $0x210] sm:$0xf0]  ;;  %v4000_v17 = vld [vmem:[#allocation8 + $0x148] sm:$0xf] }
 0x11a   :  { %2527 = vmatpush.bf16.msra.mxu3 %v3869_v23  ;;  %v4296_v23 = vld [vmem:[#allocation8 + $0x3a0] sm:$0xf] }
 0x11b   :  { %v4297_v31 = vor.u32 %v4784_v24, %v4296_v23  ;;  %2491 = vmatmul.bf16.vlgmr.msrb.gmra.mxu1 %v5164_v7  ;;  %v5167_v38 = vpop.f32.mrf.mxu0  ;;  %v3954_v23 = vld [vmem:[#allocation8 + $0xf8] sm:$0xf0]  ;;  %v4233_v24 = vor.u32 %v4768_v20, %v4232_v19  ;;  %v4675_v19 = vld [vmem:[#allocation8 + $0x4c] sm:$0xf] }
 0x11c   :  { %2541 = vmatpush.bf16.msra.mxu1 %v3981_v16  ;;  %v1500_v36 = vpop.f32.mrf.mxu3  ;;  %2551 = vmatpush.bf16.msra.mxu2 %v4157_v28  ;;  %v4048_v16 = vld [vmem:[#allocation8 + $0x1a8] sm:$0xf]  ;;  %v5169_v46 = vpop.f32.mrf.mxu1  ;;  %v4705_v28 = vld [vmem:[#allocation8 + $0x134] sm:$0xf0] }
 0x11d   :  { %2511 = vmatpush.bf16.msrb.mxu0 %v4297_v31  ;;  %v4049_v57 = vor.u32 %v4721_v6, %v4048_v16  ;;  %v4216_v36 = vld [vmem:[#allocation8 + $0x300] sm:$0xf]  ;;  %v330_v16 = vperm.slane %v5137_v2, 2 }
 0x11e   :  { %2528 = vmatpush.bf16.msra.mxu3 %v3853_v39  ;;  %v4065_v39 = vor.u32 %v4725_v27, %v4064_v26  ;;  %v3841_v26 = vor.u32 %v4669_v14, %v3840_v11  ;;  %v3984_v27 = vld [vmem:[#allocation8 + $0x128] sm:$0xf]  ;;  %v4679_v11 = vld [vmem:[#allocation8 + $0x6c] sm:$0xf]  ;;  %v4778_v14 = vld [vmem:[#allocation8 + $0x384] sm:$0xf] }
 0x120   :  { %2542 = vmatpush.bf16.msra.mxu1 %v3965_v35  ;;  %2552 = vmatpush.bf16.msra.mxu2 %v4141_v41  ;;  %v4265_v35 = vor.u32 %v4776_v54, %v4264_v25  ;;  %v4314_v25 = vld [vmem:[#allocation8 + $0x3d0] sm:$0xf0]  ;;  %v1512_v54 = vadd.f32 %v5169_v46, %v330_v16  ;;  %v4066_v46 = vld [vmem:[#allocation8 + $0x1d8] sm:$0xf0]  ;;  %v4711_v16 = vld [vmem:[#allocation8 + $0x16c] sm:$0xf] }
 0x121   :  { %2512 = vmatpush.bf16.msrb.mxu0 %v4281_v44  ;;  %v4333_v44 = vor.u32 %v4790_v42, %v4330_v43  ;;  %v4250_v42 = vld [vmem:[#allocation8 + $0x350] sm:$0xf0] }
 0x122   :  { %2529 = vmatpush.bf16.msra.mxu3 %v3837_v53  ;;  %v4125_v53 = vor.u32 %v4738_v49, %v4122_v50  ;;  %v3968_v49 = vld [vmem:[#allocation8 + $0x108] sm:$0xf]  ;;  %v4701_v50 = vld [vmem:[#allocation8 + $0x114] sm:$0xf0] }
 0x123   :  { %v1539_v63 = vpop.f32.mrf.mxu0 }
 0x124   :  { %2587 = vmatpush.bf16.msrb.mxu1 %v4081_v21  ;;  %2553 = vmatpush.bf16.msra.mxu2 %v4125_v53  ;;  %v1513_v12 = vpop.f32.mrf.mxu1  ;;  %v4709_v21 = vld [vmem:[#allocation8 + $0x154] sm:$0xf0]  ;;  %v4786_v53 = vld [vmem:[#allocation8 + $0x3c4] sm:$0xf] }
 0x125   :  { %2530 = vmatmul.bf16.vlgmr.msra.gmra.mxu3 %v5157_v51  ;;  %2513 = vmatpush.bf16.msrb.mxu0 %v4265_v35  ;;  %v4001_v31 = vor.u32 %v4709_v21, %v4000_v17  ;;  %v4317_v35 = vor.u32 %v4786_v53, %v4314_v25  ;;  %v4069_v12 = vor.u32 %v4723_v5, %v4066_v46  ;;  %v4050_v17 = vld [vmem:[#allocation8 + $0x1b8] sm:$0xf0]  ;;  %v4766_v25 = vld [vmem:[#allocation8 + $0x324] sm:$0xf]  ;;  %v4218_v5 = vld [vmem:[#allocation8 + $0x310] sm:$0xf0] }
 0x126   :  { %2574 = vmatpush.bf16.msrb.mxu3 %v3953_v30  ;;  %v4032_v30 = vld [vmem:[#allocation8 + $0x188] sm:$0xf]  ;;  %v3874_v21 = vld [vmem:[#allocation8 + $0x58] sm:$0xf0]  ;;  %v4703_v46 = vld [vmem:[#allocation8 + $0x12c] sm:$0xf] }
 0x127   :  { %v4033_v0 = vor.u32 %v4717_v56, %v4032_v30  ;;  %v5173_v10 = vpop.f32.mrf.mxu2  ;;  %v4727_v30 = vld [vmem:[#allocation8 + $0x1ec] sm:$0xf]  ;;  %v4082_v56 = vld [vmem:[#allocation8 + $0x1f8] sm:$0xf0] }
 0x128   :  { %2588 = vmatpush.bf16.msrb.mxu1 %v4065_v39  ;;  %v5171_v62 = vpop.f32.mrf.mxu3  ;;  %v4764_v39 = vld [vmem:[#allocation8 + $0x30c] sm:$0xf0]  ;;  %v4085_v63 = vor.u32 %v4727_v30, %v4082_v56  ;;  %v3842_v53 = vld [vmem:[#allocation8 + $0x18] sm:$0xf0]  ;;  %v4707_v56 = vld [vmem:[#allocation8 + $0x14c] sm:$0xf] }
 0x129   :  { %2514 = vmatpush.bf16.msrb.mxu0 %v4249_v9  ;;  %v4217_v41 = vor.u32 %v4764_v39, %v4216_v36  ;;  %v1525_v4 = vadd.f32 %v5171_v62, %v1512_v54  ;;  %v4234_v54 = vld [vmem:[#allocation8 + $0x330] sm:$0xf0] }
 0x12a   :  { %2575 = vmatpush.bf16.msrb.mxu3 %v3937_v3  ;;  %v4109_v3 = vor.u32 %v4734_v60, %v4106_v61  ;;  %v4683_v60 = vld [vmem:[#allocation8 + $0x8c] sm:$0xf] }
 0x12b   :  { %2543 = vmatmul.bf16.vlgmr.msra.gmra.mxu1 %v5164_v7  ;;  %v5176_v34 = vpop.f32.mrf.mxu0 }
 0x12c   :  { %2589 = vmatpush.bf16.msrb.mxu1 %v4049_v57  ;;  %2554 = vmatpush.bf16.msra.mxu2 %v4109_v3  ;;  %v4687_v57 = vld [vmem:[#allocation8 + $0xac] sm:$0xf]  ;;  %v4298_v3 = vld [vmem:[#allocation8 + $0x3b0] sm:$0xf0] }
 0x12d   :  { %2515 = vmatpush.bf16.msrb.mxu0 %v4233_v24  ;;  %v3925_v59 = vor.u32 %v4687_v57, %v3922_v52  ;;  %v4301_v37 = vor.u32 %v4782_v1, %v4298_v3  ;;  %v4667_v57 = vld [vmem:[#allocation8 + $0xc] sm:$0xf] }
 0x12e   :  { %2576 = vmatpush.bf16.msrb.mxu3 %v3921_v18  ;;  %v4093_v18 = vor.u32 %v4730_v15, %v4090_v55  ;;  %v4282_v15 = vld [vmem:[#allocation8 + $0x390] sm:$0xf0]  ;;  %v1538_v55 = vadd.f32 %v5167_v38, %v1525_v4  ;;  %v4762_v4 = vld [vmem:[#allocation8 + $0x304] sm:$0xf] }
 0x12f   :  { %v1552_v6 = vpop.f32.mrf.mxu2  ;;  %v4285_v62 = vor.u32 %v4778_v14, %v4282_v15  ;;  %v4699_v15 = vld [vmem:[#allocation8 + $0x10c] sm:$0xf] }
 0x130   :  { %2590 = vmatpush.bf16.msrb.mxu1 %v4033_v0  ;;  %v1526_v33 = vpop.f32.mrf.mxu3  ;;  %2555 = vmatpush.bf16.msra.mxu2 %v4093_v18  ;;  %v3906_v0 = vld [vmem:[#allocation8 + $0x98] sm:$0xf0]  ;;  %v1551_v24 = vadd.f32 %v5173_v10, %v1538_v55 }
 0x131   :  { %2516 = vmatpush.bf16.msrb.mxu0 %v4217_v41  ;;  %v3909_v9 = vor.u32 %v4683_v60, %v3906_v0  ;;  %v4671_v33 = vld [vmem:[#allocation8 + $0x2c] sm:$0xf]  ;;  %v4770_v41 = vld [vmem:[#allocation8 + $0x344] sm:$0xf]  ;;  %v4018_v10 = vld [vmem:[#allocation8 + $0x178] sm:$0xf0] }
 0x132   :  { %2577 = vmatpush.bf16.msrb.mxu3 %v3905_v29  ;;  %v3957_v29 = vor.u32 %v4695_v22, %v3954_v23  ;;  %v4774_v22 = vld [vmem:[#allocation8 + $0x364] sm:$0xf]  ;;  %v4266_v23 = vld [vmem:[#allocation8 + $0x370] sm:$0xf0]  ;;  %v4021_v52 = vor.u32 %v4711_v16, %v4018_v10  ;;  %v4757_v0 = vld [vmem:[#allocation8 + $0x2d4] sm:$0xf0] }
 0x133   :  { %v1591_v61 = vpop.f32.mrf.mxu0  ;;  %v4269_v38 = vor.u32 %v4774_v22, %v4266_v23  ;;  %v3970_v55 = vld [vmem:[#allocation8 + $0x118] sm:$0xf0]  ;;  %v4745_v22 = vld [vmem:[#allocation8 + $0x274] sm:$0xf0]  ;;  %v4759_v10 = vld [vmem:[#allocation8 + $0x2ec] sm:$0xf] }
 0x134   :  { %2591 = vmatpush.bf16.msrb.mxu1 %v4017_v45  ;;  %v4719_v45 = vld [vmem:[#allocation8 + $0x1ac] sm:$0xf] }
 0x135   :  { %2561 = vmatpush.bf16.msra.mxu0 %v4333_v44  ;;  %v4053_v20 = vor.u32 %v4719_v45, %v4050_v17  ;;  %v4253_v44 = vor.u32 %v4770_v41, %v4250_v42  ;;  %v4160_v17 = vld [vmem:[#allocation8 + $0x288] sm:$0xf] }
 0x136   :  { %2578 = vmatpush.bf16.msrb.mxu3 %v3889_v47  ;;  %v3985_v47 = vor.u32 %v4705_v28, %v3984_v27  ;;  %v4034_v27 = vld [vmem:[#allocation8 + $0x198] sm:$0xf0] }
 0x138   :  { %2592 = vmatpush.bf16.msrb.mxu1 %v4001_v31 }
 0x139   :  { %2562 = vmatpush.bf16.msra.mxu0 %v4317_v35  ;;  %v4002_v35 = vld [vmem:[#allocation8 + $0x158] sm:$0xf0] }
 0x13a   :  { %2579 = vmatpush.bf16.msrb.mxu3 %v3873_v58  ;;  %v3969_v58 = vor.u32 %v4701_v50, %v3968_v49  ;;  %v4208_v49 = vld [vmem:[#allocation8 + $0x2e8] sm:$0xf]  ;;  %v4761_v50 = vld [vmem:[#allocation8 + $0x2f4] sm:$0xf0]  ;;  %v4005_v1 = vor.u32 %v4707_v56, %v4002_v35 }
 0x13b   :  { %v4209_v60 = vor.u32 %v4761_v50, %v4208_v49  ;;  %v4755_v50 = vld [vmem:[#allocation8 + $0x2cc] sm:$0xf] }
 0x13c   :  { %2593 = vmatpush.bf16.msrb.mxu1 %v3985_v47  ;;  %v1563_v8 = vpop.f32.mrf.mxu1 }
 0x13d   :  { %2563 = vmatpush.bf16.msra.mxu0 %v4301_v37  ;;  %v1564_v31 = vadd.f32 %v1563_v8, %v1551_v24  ;;  %v3986_v37 = vld [vmem:[#allocation8 + $0x138] sm:$0xf0] }
 0x13e   :  { %2580 = vmatpush.bf16.msrb.mxu3 %v3857_v13  ;;  %v3890_v13 = vld [vmem:[#allocation8 + $0x78] sm:$0xf0]  ;;  %v3989_v14 = vor.u32 %v4703_v46, %v3986_v37  ;;  %v4304_v37 = vld [vmem:[#allocation8 + $0x3a8] sm:$0xf] }
 0x13f   :  { %v3893_v18 = vor.u32 %v4679_v11, %v3890_v13  ;;  %v5185_v28 = vpop.f32.mrf.mxu0  ;;  %v4753_v13 = vld [vmem:[#allocation8 + $0x2b4] sm:$0xf0]  ;;  %v4162_v46 = vld [vmem:[#allocation8 + $0x298] sm:$0xf0] }
 0x140   :  { %2594 = vmatpush.bf16.msrb.mxu1 %v3969_v58 }
 0x141   :  { %2564 = vmatpush.bf16.msra.mxu0 %v4285_v62  ;;  %v4749_v62 = vld [vmem:[#allocation8 + $0x294] sm:$0xf0] }
 0x142   :  { %2581 = vmatpush.bf16.msrb.mxu3 %v3841_v26  ;;  %v4715_v26 = vld [vmem:[#allocation8 + $0x18c] sm:$0xf] }
 0x143   :  { %2595 = vmatmul.bf16.vlgmr.msrb.gmra.mxu1 %v5164_v7  ;;  %v4037_v39 = vor.u32 %v4715_v26, %v4034_v27  ;;  %v4128_v27 = vld [vmem:[#allocation8 + $0x248] sm:$0xf] }
 0x144   :  { %2639 = vmatpush.bf16.msra.mxu1 %v4085_v63  ;;  %v1565_v32 = vpop.f32.mrf.mxu1  ;;  %v4192_v63 = vld [vmem:[#allocation8 + $0x2c8] sm:$0xf] }
 0x145   :  { %2582 = vmatmul.bf16.vlgmr.msrb.gmra.mxu3 %v5157_v51  ;;  %2565 = vmatpush.bf16.msra.mxu0 %v4269_v38  ;;  %v4193_v11 = vor.u32 %v4757_v0, %v4192_v63  ;;  %v4737_v32 = vld [vmem:[#allocation8 + $0x234] sm:$0xf0]  ;;  %v4320_v63 = vld [vmem:[#allocation8 + $0x3c8] sm:$0xf] }
 0x146   :  { %2626 = vmatpush.bf16.msra.mxu3 %v3957_v29  ;;  %v3877_v29 = vor.u32 %v4675_v19, %v3874_v21  ;;  %v3973_v19 = vor.u32 %v4699_v15, %v3970_v55  ;;  %v4144_v21 = vld [vmem:[#allocation8 + $0x268] sm:$0xf]  ;;  %v4789_v0 = vld [vmem:[#allocation8 + $0x3d4] sm:$0xf0] }
 0x147   :  { %v1602_v6 = vpop.f32.mrf.mxu2  ;;  %v1617_v58 = vpop.f32.mrf.mxu0  ;;  %v4145_v26 = vor.u32 %v4745_v22, %v4144_v21  ;;  %v4781_v15 = vld [vmem:[#allocation8 + $0x394] sm:$0xf0]  ;;  %v4735_v22 = vld [vmem:[#allocation8 + $0x22c] sm:$0xf] }
 0x148   :  { %2640 = vmatpush.bf16.msra.mxu1 %v4069_v12  ;;  %v1576_v36 = vpop.f32.mrf.mxu3  ;;  %v4176_v12 = vld [vmem:[#allocation8 + $0x2a8] sm:$0xf] }
 0x149   :  { %v1577_v43 = vadd.f32 %v1576_v36, %v1564_v31  ;;  %2566 = vmatpush.bf16.msra.mxu0 %v4253_v44  ;;  %v4177_v45 = vor.u32 %v4753_v13, %v4176_v12  ;;  %v4743_v12 = vld [vmem:[#allocation8 + $0x26c] sm:$0xf]  ;;  %v4146_v13 = vld [vmem:[#allocation8 + $0x278] sm:$0xf0] }
 0x14a   :  { %2627 = vmatpush.bf16.msra.mxu3 %v3941_v48  ;;  %v3861_v48 = vor.u32 %v4671_v33, %v3858_v40  ;;  %v4149_v55 = vor.u32 %v4743_v12, %v4146_v13 }
 0x14b   :  { %v1590_v47 = vadd.f32 %v5176_v34, %v1577_v43  ;;  %v3845_v34 = vor.u32 %v4667_v57, %v3842_v53  ;;  %v4096_v43 = vld [vmem:[#allocation8 + $0x208] sm:$0xf]  ;;  %v4194_v57 = vld [vmem:[#allocation8 + $0x2d8] sm:$0xf0] }
 0x14c   :  { %2641 = vmatpush.bf16.msra.mxu1 %v4053_v20  ;;  %v4161_v20 = vor.u32 %v4749_v62, %v4160_v17  ;;  %v4197_v35 = vor.u32 %v4755_v50, %v4194_v57  ;;  %v4739_v17 = vld [vmem:[#allocation8 + $0x24c] sm:$0xf]  ;;  %v4130_v62 = vld [vmem:[#allocation8 + $0x258] sm:$0xf0]  ;;  %v5203_v57 = vld [vmem:[#allocation10] sm:$0xf] }
 0x14d   :  { %v1686_v30 = vmax.f32 %v1590_v47, 0.0  ;;  %v4290_v50 = vld [vmem:[#allocation8 + $0x398] sm:$0xf0] }
 0x14e   :  { %2628 = vmatpush.bf16.msra.mxu3 %v3925_v59  ;;  %v4237_v59 = vor.u32 %v4766_v25, %v4234_v54  ;;  %v4336_v25 = vld [vmem:[#allocation8 + $0x3e8] sm:$0xf]  ;;  %v4793_v54 = vld [vmem:[#allocation8 + $0x3f4] sm:$0xf0] }
 0x14f   :  { %v5188_v61 = vpack.c.bf16 %v1686_v30, %v1686_v30  ;;  %v1604_v8 = vpop.f32.mrf.mxu2  ;;  %v4337_v58 = vor.u32 %v4793_v54, %v4336_v25  ;;  %v4274_v25 = vld [vmem:[#allocation8 + $0x378] sm:$0xf0] }
 0x150   :  { %2642 = vmatpush.bf16.msra.mxu1 %v4037_v39  ;;  %v1578_v3 = vpop.f32.mrf.mxu3  ;;  %2567 = vmatpush.bf16.msra.mxu0 %v4237_v59  ;;  %v4751_v59 = vld [vmem:[#allocation8 + $0x2ac] sm:$0xf]  ;;  %v4785_v8 = vld [vmem:[#allocation8 + $0x3b4] sm:$0xf0] }
 0x151   :  { %2504 = vmatmul.bf16.vlgmr.msrb.gmra.mxu2 %v5188_v61 }
 0x152   :  { %2629 = vmatpush.bf16.msra.mxu3 %v3909_v9  ;;  %v4221_v9 = vor.u32 %v4762_v4, %v4218_v5  ;;  %2600 = vmatpush.bf16.msrb.mxu2 %v4209_v60  ;;  %v4178_v60 = vld [vmem:[#allocation8 + $0x2b8] sm:$0xf0]  ;;  %v4321_v4 = vor.u32 %v4789_v0, %v4320_v63  ;;  %v4747_v5 = vld [vmem:[#allocation8 + $0x28c] sm:$0xf] }
 0x153   :  { %v4767_v0 = vld [vmem:[#allocation8 + $0x32c] sm:$0xf] }
 0x154   :  { %2643 = vmatpush.bf16.msra.mxu1 %v4021_v52  ;;  %2568 = vmatpush.bf16.msra.mxu0 %v4221_v9  ;;  %v4165_v9 = vor.u32 %v4747_v5, %v4162_v46  ;;  %v4226_v5 = vld [vmem:[#allocation8 + $0x318] sm:$0xf0] }
 0x156   :  { %2630 = vmatpush.bf16.msra.mxu3 %v3893_v18  ;;  %2601 = vmatpush.bf16.msrb.mxu2 %v4193_v11  ;;  %v331_v18 = vperm.slane %v5137_v2, 3  ;;  %v4305_v11 = vor.u32 %v4785_v8, %v4304_v37 }
 0x158   :  { %2644 = vmatpush.bf16.msra.mxu1 %v4005_v1  ;;  %v1603_v23 = vadd.f32 %v1602_v6, %v331_v18  ;;  %v4210_v6 = vld [vmem:[#allocation8 + $0x2f8] sm:$0xf0]  ;;  %v4181_v1 = vor.u32 %v4751_v59, %v4178_v60  ;;  %v4272_v18 = vld [vmem:[#allocation8 + $0x368] sm:$0xf] }
 0x15a   :  { %2631 = vmatpush.bf16.msra.mxu3 %v3877_v29  ;;  %2602 = vmatpush.bf16.msrb.mxu2 %v4177_v45  ;;  %v1616_v38 = vadd.f32 %v5185_v28, %v1603_v23  ;;  %v4112_v29 = vld [vmem:[#allocation8 + $0x228] sm:$0xf]  ;;  %v4114_v23 = vld [vmem:[#allocation8 + $0x238] sm:$0xf0] }
 0x15b   :  { %v4113_v42 = vor.u32 %v4737_v32, %v4112_v29  ;;  %v4240_v29 = vld [vmem:[#allocation8 + $0x328] sm:$0xf]  ;;  %v4769_v32 = vld [vmem:[#allocation8 + $0x334] sm:$0xf0] }
 0x15c   :  { %2645 = vmatpush.bf16.msra.mxu1 %v3989_v14  ;;  %v1628_v24 = vpop.f32.mrf.mxu1  ;;  %v4288_v14 = vld [vmem:[#allocation8 + $0x388] sm:$0xf] }
 0x15d   :  { %v1629_v33 = vadd.f32 %v1628_v24, %v1616_v38  ;;  %v4289_v45 = vor.u32 %v4781_v15, %v4288_v14  ;;  %v4256_v24 = vld [vmem:[#allocation8 + $0x348] sm:$0xf]  ;;  %v4801_v14 = vld [vmem:[#allocation11 + $0x38] sm:$0xff] }
 0x15e   :  { %2632 = vmatpush.bf16.msra.mxu3 %v3861_v48  ;;  %2603 = vmatpush.bf16.msrb.mxu2 %v4161_v20  ;;  %v4213_v48 = vor.u32 %v4759_v10, %v4210_v6  ;;  %v4133_v20 = vor.u32 %v4739_v17, %v4130_v62  ;;  %v4787_v10 = vld [vmem:[#allocation8 + $0x3cc] sm:$0xf]  ;;  %v4322_v6 = vld [vmem:[#allocation8 + $0x3d8] sm:$0xf0] }
 0x15f   :  { %v1667_v2 = vpop.f32.mrf.mxu0 }
 0x160   :  { %2646 = vmatpush.bf16.msra.mxu1 %v3973_v19  ;;  %v4777_v19 = vld [vmem:[#allocation8 + $0x374] sm:$0xf0] }
 0x161   :  { %2556 = vmatmul.bf16.vlgmr.msra.gmra.mxu2 %v5188_v61  ;;  %v4273_v21 = vor.u32 %v4777_v19, %v4272_v18  ;;  %v4799_v18 = vld [vmem:[#allocation11 + $0x28] sm:$0xff] }
 0x162   :  { %2633 = vmatpush.bf16.msra.mxu3 %v3845_v34  ;;  %2604 = vmatpush.bf16.msrb.mxu2 %v4145_v26  ;;  %v4773_v26 = vld [vmem:[#allocation8 + $0x354] sm:$0xf0] }
 0x163   :  { %2647 = vmatmul.bf16.vlgmr.msra.gmra.mxu1 %v5164_v7  ;;  %v4733_v7 = vld [vmem:[#allocation8 + $0x214] sm:$0xf0]  ;;  %v4257_v38 = vor.u32 %v4773_v26, %v4256_v24  ;;  %v4809_v24 = vld [vmem:[#allocation11 + $0x78] sm:$0xff] }
 0x164   :  { %v1630_v36 = vpop.f32.mrf.mxu1  ;;  %v4097_v47 = vor.u32 %v4733_v7, %v4096_v43  ;;  %v4338_v43 = vld [vmem:[#allocation8 + $0x3f8] sm:$0xf0]  ;;  %2959 = vmatpush.bf16.msrb.mxu1 %v4809_v24  ;;  %v4796_v26 = vld [vmem:[#allocation11 + $0x10] sm:$0xff] }
 0x165   :  { %2634 = vmatmul.bf16.vlgmr.msra.gmra.mxu3 %v5157_v51  ;;  %v4741_v51 = vld [vmem:[#allocation8 + $0x254] sm:$0xf0]  ;;  %v4241_v36 = vor.u32 %v4769_v32, %v4240_v29  ;;  %v1825_v32 = vperm.slane %v5203_v57, 3 }
 0x166   :  { %v4129_v31 = vor.u32 %v4741_v51, %v4128_v27  ;;  %v4117_v51 = vor.u32 %v4735_v22, %v4114_v23  ;;  %2946 = vmatpush.bf16.msrb.mxu3 %v4801_v14  ;;  %v4797_v23 = vld [vmem:[#allocation11 + $0x18] sm:$0xff]  ;;  %v4819_v14 = vld [vmem:[#allocation11 + $0xc8] sm:$0xff] }
 0x167   :  { %v1654_v41 = vpop.f32.mrf.mxu2  ;;  %v1669_v28 = vpop.f32.mrf.mxu0 }
 0x168   :  { %v1641_v39 = vpop.f32.mrf.mxu3  ;;  %2605 = vmatpush.bf16.msrb.mxu2 %v4129_v31  ;;  %v4098_v31 = vld [vmem:[#allocation8 + $0x218] sm:$0xf0]  ;;  %v4325_v28 = vor.u32 %v4787_v10, %v4322_v6  ;;  %v4803_v10 = vld [vmem:[#allocation11 + $0x48] sm:$0xff] }
 0x169   :  { %v1642_v40 = vadd.f32 %v1641_v39, %v1629_v33  ;;  %v4224_v39 = vld [vmem:[#allocation8 + $0x308] sm:$0xf]  ;;  %v4815_v6 = vld [vmem:[#allocation11 + $0xa8] sm:$0xff] }
 0x16b   :  { %v1655_v16 = vadd.f32 %v1654_v41, %v1642_v40  ;;  %v4765_v40 = vld [vmem:[#allocation8 + $0x314] sm:$0xf0] }
 0x16c   :  { %2606 = vmatpush.bf16.msrb.mxu2 %v4113_v42  ;;  %v1680_v49 = vpop.f32.mrf.mxu1  ;;  %v4791_v42 = vld [vmem:[#allocation8 + $0x3ec] sm:$0xf]  ;;  %v4225_v7 = vor.u32 %v4765_v40, %v4224_v39 }
 0x16d   :  { %v1668_v44 = vadd.f32 %v1667_v2, %v1655_v16  ;;  %v4731_v2 = vld [vmem:[#allocation8 + $0x20c] sm:$0xf]  ;;  %v4341_v16 = vor.u32 %v4791_v42, %v4338_v43  ;;  %v4816_v42 = vld [vmem:[#allocation11 + $0xb0] sm:$0xff] }
 0x16e   :  { %v4101_v33 = vor.u32 %v4731_v2, %v4098_v31  ;;  %v4794_v2 = vld [vmem:[#allocation11] sm:$0xff] }
 0x16f   :  { %v1681_v52 = vadd.f32 %v1680_v49, %v1668_v44  ;;  %v1656_v30 = vpop.f32.mrf.mxu2  ;;  %v4783_v44 = vld [vmem:[#allocation8 + $0x3ac] sm:$0xf]  ;;  %v4806_v31 = vld [vmem:[#allocation11 + $0x60] sm:$0xff] }
 0x170   :  { %v1643_v53 = vpop.f32.mrf.mxu3  ;;  %2607 = vmatpush.bf16.msrb.mxu2 %v4097_v47  ;;  %v4306_v47 = vld [vmem:[#allocation8 + $0x3b8] sm:$0xf0]  ;;  %v4779_v49 = vld [vmem:[#allocation8 + $0x38c] sm:$0xf] }
 0x171   :  { %v1687_v56 = vmax.f32 %v1681_v52, 0.0  ;;  %v4293_v52 = vor.u32 %v4779_v49, %v4290_v50  ;;  %v1822_v53 = vperm.slane %v5203_v57, 0  ;;  %v4813_v50 = vld [vmem:[#allocation11 + $0x98] sm:$0xff] }
 0x173   :  { %v5196_v34 = vpack.c.bf16 %v1687_v56, %v1687_v56  ;;  %2608 = vmatmul.bf16.vlgmr.msrb.gmra.mxu2 %v5188_v61  ;;  %v4771_v56 = vld [vmem:[#allocation8 + $0x34c] sm:$0xf] }
 0x174   :  { %2652 = vmatpush.bf16.msra.mxu2 %v4213_v48  ;;  %v1682_v3 = vpop.f32.mrf.mxu1  ;;  %v4309_v48 = vor.u32 %v4783_v44, %v4306_v47  ;;  %v4802_v44 = vld [vmem:[#allocation11 + $0x40] sm:$0xff] }
 0x175   :  { %2517 = vmatmul.bf16.vlgmr.msrb.gmra.mxu0 %v5196_v34  ;;  %v4814_v47 = vld [vmem:[#allocation11 + $0xa0] sm:$0xff] }
 0x176   :  { %2613 = vmatpush.bf16.msrb.mxu0 %v4337_v58 }
 0x178   :  { %2653 = vmatpush.bf16.msra.mxu2 %v4197_v35  ;;  %v4258_v35 = vld [vmem:[#allocation8 + $0x358] sm:$0xf0] }
 0x179   :  { %v4261_v63 = vor.u32 %v4771_v56, %v4258_v35  ;;  %v4810_v56 = vld [vmem:[#allocation11 + $0x80] sm:$0xff]  ;;  %v4825_v35 = vld [vmem:[#allocation11 + $0xf8] sm:$0xff] }
 0x17a   :  { %2614 = vmatpush.bf16.msrb.mxu0 %v4321_v4  ;;  %v4763_v4 = vld [vmem:[#allocation8 + $0x30c] sm:$0xf] }
 0x17b   :  { %v4229_v8 = vor.u32 %v4763_v4, %v4226_v5  ;;  %v4822_v4 = vld [vmem:[#allocation11 + $0xe0] sm:$0xff] }
 0x17c   :  { %2654 = vmatpush.bf16.msra.mxu2 %v4181_v1  ;;  %v4242_v1 = vld [vmem:[#allocation8 + $0x338] sm:$0xf0] }
 0x17d   :  { %v4245_v3 = vor.u32 %v4767_v0, %v4242_v1  ;;  %v4823_v1 = vld [vmem:[#allocation11 + $0xe8] sm:$0xff] }
 0x17e   :  { %2615 = vmatpush.bf16.msrb.mxu0 %v4305_v11 }
 0x180   :  { %2655 = vmatpush.bf16.msra.mxu2 %v4165_v9  ;;  %v1823_v9 = vperm.slane %v5203_v57, 1 }
 0x182   :  { %2616 = vmatpush.bf16.msrb.mxu0 %v4289_v45  ;;  %v4800_v45 = vld [vmem:[#allocation11 + $0x30] sm:$0xff] }
 0x183   :  { %2947 = vmatpush.bf16.msrb.mxu3 %v4800_v45 }
 0x184   :  { %2656 = vmatpush.bf16.msra.mxu2 %v4149_v55  ;;  %v1824_v55 = vperm.slane %v5203_v57, 2  ;;  %v4812_v57 = vld [vmem:[#allocation11 + $0x90] sm:$0xff] }
 0x185   :  { %2569 = vmatmul.bf16.vlgmr.msra.gmra.mxu0 %v5196_v34 }
 0x186   :  { %2617 = vmatpush.bf16.msrb.mxu0 %v4273_v21  ;;  %v4798_v21 = vld [vmem:[#allocation11 + $0x20] sm:$0xff] }
 0x187   :  { %2948 = vmatpush.bf16.msrb.mxu3 %v4799_v18 }
 0x188   :  { %v2479_v27 = vpop.f32.mrf.mxu3  ;;  %2657 = vmatpush.bf16.msra.mxu2 %v4133_v20 }
 0x189   :  { %v2480_v30 = vadd.f32 %v2479_v27, %v1822_v53  ;;  %v4808_v27 = vld [vmem:[#allocation11 + $0x70] sm:$0xff] }
 0x18a   :  { %2618 = vmatpush.bf16.msrb.mxu0 %v4257_v38  ;;  %2960 = vmatpush.bf16.msrb.mxu1 %v4808_v27  ;;  %v4807_v38 = vld [vmem:[#allocation11 + $0x68] sm:$0xff] }
 0x18b   :  { %2949 = vmatpush.bf16.msrb.mxu3 %v4798_v21 }
 0x18c   :  { %2658 = vmatpush.bf16.msra.mxu2 %v4117_v51  ;;  %v4795_v51 = vld [vmem:[#allocation11 + $0x8] sm:$0xff] }
 0x18e   :  { %2619 = vmatpush.bf16.msrb.mxu0 %v4241_v36  ;;  %2961 = vmatpush.bf16.msrb.mxu1 %v4807_v38  ;;  %v4817_v36 = vld [vmem:[#allocation11 + $0xb8] sm:$0xff] }
 0x18f   :  { %2950 = vmatpush.bf16.msrb.mxu3 %v4797_v23 }
 0x190   :  { %v2481_v41 = vpop.f32.mrf.mxu3  ;;  %2659 = vmatpush.bf16.msra.mxu2 %v4101_v33  ;;  %v4805_v33 = vld [vmem:[#allocation11 + $0x58] sm:$0xff] }
 0x191   :  { %v4804_v41 = vld [vmem:[#allocation11 + $0x50] sm:$0xff] }
 0x192   :  { %2620 = vmatpush.bf16.msrb.mxu0 %v4225_v7  ;;  %2962 = vmatpush.bf16.msrb.mxu1 %v4806_v31 }
 0x193   :  { %2660 = vmatmul.bf16.vlgmr.msra.gmra.mxu2 %v5188_v61  ;;  %v4775_v61 = vld [vmem:[#allocation8 + $0x36c] sm:$0xf]  ;;  %2951 = vmatpush.bf16.msrb.mxu3 %v4796_v26 }
 0x194   :  { %v4277_v54 = vor.u32 %v4775_v61, %v4274_v25  ;;  %2972 = vmatpush.bf16.msrb.mxu2 %v4817_v36  ;;  %v4811_v61 = vld [vmem:[#allocation11 + $0x88] sm:$0xff] }
 0x195   :  { %2621 = vmatmul.bf16.vlgmr.msrb.gmra.mxu0 %v5196_v34 }
 0x196   :  { %2665 = vmatpush.bf16.msra.mxu0 %v4341_v16  ;;  %2963 = vmatpush.bf16.msrb.mxu1 %v4805_v33 }
 0x197   :  { %2952 = vmatpush.bf16.msrb.mxu3 %v4795_v51 }
 0x198   :  { %v2492_v58 = vpop.f32.mrf.mxu1  ;;  %2973 = vmatpush.bf16.msrb.mxu2 %v4816_v42 }
 0x199   :  { %v5206_v60 = vadd.f32 %v2492_v58, %v2480_v30 }
 0x19a   :  { %2666 = vmatpush.bf16.msra.mxu0 %v4325_v28  ;;  %2964 = vmatpush.bf16.msrb.mxu1 %v4804_v41 }
 0x19b   :  { %2953 = vmatpush.bf16.msrb.mxu3 %v4794_v2 }
 0x19c   :  { %2974 = vmatpush.bf16.msrb.mxu2 %v4815_v6 }
 0x19e   :  { %2667 = vmatpush.bf16.msra.mxu0 %v4309_v48  ;;  %2965 = vmatpush.bf16.msrb.mxu1 %v4803_v10 }
 0x1a0   :  { %v2494_v46 = vpop.f32.mrf.mxu1  ;;  %2975 = vmatpush.bf16.msrb.mxu2 %v4814_v47 }
 0x1a2   :  { %2668 = vmatpush.bf16.msra.mxu0 %v4293_v52  ;;  %2966 = vmatpush.bf16.msrb.mxu1 %v4802_v44 }
 0x1a4   :  { %2976 = vmatpush.bf16.msrb.mxu2 %v4813_v50 }
 0x1a6   :  { %2669 = vmatpush.bf16.msra.mxu0 %v4277_v54 }
 0x1a8   :  { %v2531_v59 = vpop.f32.mrf.mxu3  ;;  %v2544_v12 = vpop.f32.mrf.mxu1  ;;  %2977 = vmatpush.bf16.msrb.mxu2 %v4812_v57 }
 0x1a9   :  { %v2532_v11 = vadd.f32 %v2531_v59, %v1823_v9 }
 0x1aa   :  { %2670 = vmatpush.bf16.msra.mxu0 %v4261_v63  ;;  %v4824_v63 = vld [vmem:[#allocation11 + $0xf0] sm:$0xff] }
 0x1ab   :  { %v5209_v13 = vadd.f32 %v2544_v12, %v2532_v11  ;;  %v4820_v11 = vld [vmem:[#allocation11 + $0xd0] sm:$0xff] }
 0x1ac   :  { %2978 = vmatpush.bf16.msrb.mxu2 %v4811_v61 }
 0x1ae   :  { %2671 = vmatpush.bf16.msra.mxu0 %v4245_v3 }
 0x1b0   :  { %v2533_v37 = vpop.f32.mrf.mxu3  ;;  %v2546_v15 = vpop.f32.mrf.mxu1  ;;  %2979 = vmatpush.bf16.msrb.mxu2 %v4810_v56 }
 0x1b1   :  { %v4821_v37 = vld [vmem:[#allocation11 + $0xd8] sm:$0xff] }
 0x1b2   :  { %2672 = vmatpush.bf16.msra.mxu0 %v4229_v8 }
 0x1b5   :  { %2673 = vmatmul.bf16.vlgmr.msra.gmra.mxu0 %v5196_v34 }
 0x1b6   :  { %2985 = vmatpush.bf16.msrb.mxu0 %v4825_v35 }
 0x1ba   :  { %2986 = vmatpush.bf16.msrb.mxu0 %v4824_v63 }
 0x1be   :  { %2987 = vmatpush.bf16.msrb.mxu0 %v4823_v1 }
 0x1c0   :  { %v2596_v19 = vpop.f32.mrf.mxu1 }
 0x1c2   :  { %2988 = vmatpush.bf16.msrb.mxu0 %v4822_v4 }
 0x1c6   :  { %2989 = vmatpush.bf16.msrb.mxu0 %v4821_v37 }
 0x1c8   :  { %v2583_v17 = vpop.f32.mrf.mxu3  ;;  %v2598_v34 = vpop.f32.mrf.mxu1 }
 0x1c9   :  { %v2584_v62 = vadd.f32 %v2583_v17, %v1824_v55  ;;  %v4818_v55 = vld [vmem:[#allocation11 + $0xc0] sm:$0xff] }
 0x1ca   :  { %2990 = vmatpush.bf16.msrb.mxu0 %v4820_v11 }
 0x1cb   :  { %v5213_v20 = vadd.f32 %v2596_v19, %v2584_v62 }
 0x1ce   :  { %2991 = vmatpush.bf16.msrb.mxu0 %v4819_v14 }
 0x1d0   :  { %v2585_v22 = vpop.f32.mrf.mxu3 }
 0x1d2   :  { %2992 = vmatpush.bf16.msrb.mxu0 %v4818_v55 }
 0x1d4   :  { %v2505_v29 = vpop.f32.mrf.mxu2 }
 0x1d5   :  { %v2506_v53 = vadd.f32 %v2505_v29, %v5206_v60 }
 0x1dc   :  { %v2507_v7 = vpop.f32.mrf.mxu2 }
 0x1e0   :  { %v2648_v43 = vpop.f32.mrf.mxu1 }
 0x1e4   :  { %v2557_v49 = vpop.f32.mrf.mxu2 }
 0x1e5   :  { %v2558_v60 = vadd.f32 %v2557_v49, %v5209_v13 }
 0x1e8   :  { %v2635_v39 = vpop.f32.mrf.mxu3  ;;  %v2650_v48 = vpop.f32.mrf.mxu1 }
 0x1e9   :  { %v2636_v40 = vadd.f32 %v2635_v39, %v1825_v32  ;;  %v4837_v32 = vld [vmem:[%s5234_s6] ss:$0 sm:$0xff]  ;;  %s5030_s6 = smov [#allocation13]  }
 0x1ea   :  { %s3027_s8 = sshll.u32 %s5030_s6, 4  ;;  %s3028_s8 = int_to_ptr.vmem [resolvable:$true] %s3027_s8 }
 0x1eb   :  { %v5216_v16 = vadd.f32 %v2648_v43, %v2636_v40 }
 0x1ec   :  { %v2559_v52 = vpop.f32.mrf.mxu2 }
 0x1f0   :  { %v2637_v28 = vpop.f32.mrf.mxu3 }
 0x1f2   :  { %v2518_v25 = vpop.f32.mrf.mxu0 }
 0x1f3   :  { %v2519_v54 = vadd.f32 %v2518_v25, %v2506_v53 }
 0x1f5   :  { %v2678_v30 = vmax.f32 %v2519_v54, 0.0 }
 0x1f6   :  { %v2609_v58 = vpop.f32.mrf.mxu2 }
 0x1f7   :  { %v2682_v59 = vpack.c.bf16 %v2678_v30, %v2678_v30  ;;  %v2610_v15 = vadd.f32 %v2609_v58, %v5213_v20 }
 0x1f9   :  { %2954 = vmatmul.bf16.vlgmr.msrb.gmra.mxu3 %v2682_v59 }
 0x1fa   :  { %v2520_v0 = vpop.f32.mrf.mxu0 }
 0x1fe   :  { %v2611_v3 = vpop.f32.mrf.mxu2 }
 0x202   :  { %v2570_v5 = vpop.f32.mrf.mxu0 }
 0x203   :  { %v2571_v46 = vadd.f32 %v2570_v5, %v2558_v60 }
 0x205   :  { %v2679_v8 = vmax.f32 %v2571_v46, 0.0 }
 0x207   :  { %v2683_v9 = vpack.c.bf16 %v2679_v8, %v2679_v8 }
 0x209   :  { %2967 = vmatmul.bf16.vlgmr.msrb.gmra.mxu1 %v2683_v9 }
 0x20a   :  { %v2572_v12 = vpop.f32.mrf.mxu0 }
 0x212   :  { %v2622_v45 = vpop.f32.mrf.mxu0 }
 0x213   :  { %v2623_v17 = vadd.f32 %v2622_v45, %v2610_v15 }
 0x215   :  { %v2680_v13 = vmax.f32 %v2623_v17, 0.0 }
 0x216   :  { %v2661_v62 = vpop.f32.mrf.mxu2 }
 0x217   :  { %v2684_v18 = vpack.c.bf16 %v2680_v13, %v2680_v13  ;;  %v2662_v22 = vadd.f32 %v2661_v62, %v5216_v16 }
 0x219   :  { %2980 = vmatmul.bf16.vlgmr.msrb.gmra.mxu2 %v2684_v18 }
 0x21a   :  { %v2624_v19 = vpop.f32.mrf.mxu0 }
 0x21e   :  { %v2663_v21 = vpop.f32.mrf.mxu2 }
 0x232   :  { %v2674_v23 = vpop.f32.mrf.mxu0 }
 0x233   :  { %v2675_v24 = vadd.f32 %v2674_v23, %v2662_v22 }
 0x235   :  { %v2681_v34 = vmax.f32 %v2675_v24, 0.0 }
 0x237   :  { %v2685_v26 = vpack.c.bf16 %v2681_v34, %v2681_v34 }
 0x239   :  { %2993 = vmatmul.bf16.vlgmr.msrb.gmra.mxu0 %v2685_v26 }
 0x23a   :  { %v2676_v27 = vpop.f32.mrf.mxu0 }
 0x27c   :  { %v2955_v51 = vpop.f32.mrf.mxu3 }
 0x27d   :  { %v2956_v33 = vadd.f32 %v4837_v32, %v2955_v51 }
 0x284   :  { %v2957_v20 = vpop.f32.mrf.mxu3 }
 0x286   :  { %v2968_v38 = vpop.f32.mrf.mxu1 }
 0x287   :  { %v2969_v36 = vadd.f32 %v2968_v38, %v2956_v33 }
 0x28e   :  { %v2970_v2 = vpop.f32.mrf.mxu1 }
 0x29c   :  { %v2981_v31 = vpop.f32.mrf.mxu2 }
 0x29d   :  { %v2982_v39 = vadd.f32 %v2981_v31, %v2969_v36 }
 0x2a4   :  { %v2983_v29 = vpop.f32.mrf.mxu2 }
 0x2b6   :  { %v2994_v40 = vpop.f32.mrf.mxu0 }
 0x2b7   :  { %v2995_v41 = vadd.f32 %v2994_v40, %v2982_v39 }
 0x2b9   :  { %2998 = vmax.xlane.f32.xlu0 %v2995_v41 }
 0x2be   :  { %v2996_v42 = vpop.f32.mrf.mxu0 }
 0x32c   :  { %v2999_v43 = vpop.xlane.xlu0 %2998 }
 0x32d   :  { %v3000_v7 = vsub.f32 %v2995_v41, %v2999_v43 }
 0x32f   :  { %v3001_v16 = vmul.f32 1.442695, %v3000_v7 }
 0x331   :  { %4838 = vpow2.f32 %v3001_v16 }
 0x337   :  { %v4839_v10 = vpop.eup %4838 }
 0x338   :  { %3003 = vadd.xlane.f32.xlu0 %v4839_v10 }
 0x3ab   :  { %v3004_v6 = vpop.xlane.xlu0 %3003 }
 0x3ac   :  { %4840 = vrcp.f32 %v3004_v6  ;;  %v3016_v48 = vand.u32 2147483648, %v3004_v6  ;;  %v3014_v50 = vand.u32 2147483647, %v3004_v6  ;;  %vm3010_vm2 = vweird.f32 %v3004_v6 }
 0x3ae   :  { %v3017_v52 = vor.u32 1.1754944e-38, %v3016_v48  ;;  %vm3015_vm4 = vcmp.eq.f32.partialorder %v3014_v50, 8.507059e+37 }
 0x3b2   :  { %v4841_v28 = vpop.eup %4840 }
 0x3b3   :  { %v3006_v44 = vmul.f32 %v4841_v28, %v3004_v6  ;;  %vm3011_vm1 = vweird.f32 %v4841_v28 }
 0x3b4   :  { %vm3012_vm3 = vmor %vm3010_vm2, %vm3011_vm1 }
 0x3b5   :  { %v3007_v47 = vsub.f32 1.0, %v3006_v44 }
 0x3b7   :  { %v3008_v49 = vmul.f32 %v4841_v28, %v3007_v47 }
 0x3b9   :  { %v3009_v57 = vadd.f32 %v4841_v28, %v3008_v49 }
 0x3bb   :  { %v3013_v53 = vsel %vm3012_vm3, %v4841_v28, %v3009_v57 }
 0x3bc   :  { %v3018_v61 = vsel %vm3015_vm4, %v3017_v52, %v3013_v53 }
 0x3bd   :  { %v3019_v25 = vmul.f32 %v4839_v10, %v3018_v61 }
 0x3bf   :  { %v3020_v54 = vpack.c.bf16 %v3019_v25, %v3019_v25 }
 0x3c1   :  { %3021 = vst [vmem:[#allocation13] sm:$0xf] %v3020_v54 }
 0x3c2   :  { %3032 = dma.vmem_to_hbm [thread:$0]  %s3028_s8, 64, %s3030_s11, [#allocation4]  }
 0x3c3   :  { %5018 = dma.done.wait [#allocation4], 64  }
 0x3c4   :  { %5019 = vsyncadd [#allocation4], 4294967232 }
 0x3c5   :  { %3037 = vsyncpa [#allocation3], 1 }
 0x3c6   :  { %3038 = vsyncpa [#allocation6], 1 }
 0x3c7   :  { %3039 = vsyncpa [#allocation9], 1 }
 0x3c8   :  { %3040 = vsyncpa [#allocation12], 1 }
 0x3c9   :  { %3041 = vsyncpa [#allocation4], 1 }

</bundles_post_ra>
